<compile_context>
chip_gen: v7x
topology: tpu7x:2x2x1
jax: 0.10.0
libtpu: 0.0.40
codegen_flags: <defaults>
</compile_context>

<pallas_src>
import jax
import jax.numpy as jnp
from jax import lax
from jax.experimental import pallas as pl
from jax.experimental.pallas import tpu as pltpu


def _round_up(x, m):
    return (x + m - 1) // m * m


def _cdiv(a, b):
    return -(-a // b)


def _vmem_budget_bytes():
    """~75% of this chip's physical VMEM (conservative 48 MiB fallback)."""
    try:
        cap = int(pltpu.get_tpu_info().vmem_capacity_bytes)
    except Exception:
        cap = 64 * 1024 * 1024          # v7x-safe fallback
    return cap * 3 // 4


def _resident_vmem_bytes(Bp, Np, Dip, Dhp, Kp):
    """VMEM that does not scale with e_tile (2x = double-buffered constants)."""
    return (2 * Dip * Dhp * 2           # W0 (bf16)
            + 2 * Dhp * Kp * 4          # W1 (f32 epilogue)
            + 2 * 3 * 8 * Dhp * 4       # b0 / gamma / beta ((1,Dhp) -> 8 sublanes)
            + 2 * 8 * Kp * 4            # b1
            + 2 * Bp * Kp * 4           # output block
            + Bp * Np * 2               # edge_nodes staging (single copy)
            + Np * Dhp * 4              # u_acc
            + 2 * 8 * Dhp * 4)          # BN sum / sum-of-squares partials


def _pick_e_tile(E, Np, Dip, resident, budget):
    """Largest E tile (multiple of 128, <= 2048) whose double-buffered
    feats+inc stream fits the VMEM budget, rebalanced across the resulting
    number of steps so the last tile is not mostly padding."""
    per_row = 4 * (Dip + Np)            # 2 bufs x bf16 x (feats row + inc col)
    avail = max(budget - resident, per_row * 128)
    cap = max(128, min(2048, avail // per_row) // 128 * 128)
    n_e = _cdiv(E, cap)
    e_tile = _round_up(_cdiv(E, n_e), 128)
    return e_tile, n_e


def _make_kernel(e_true, e_tile, ep, dhp, kp, n_e, bn_eps):
    n_pad = ep - e_true                 # zero-feature padded E rows
    last = n_e - 1
    prefetch_step = max(n_e - 2, 0)     # overlap the edge_nodes DMA w/ compute

    def kernel(feats_ref, inc_ref, en_hbm, w0_ref, b0_ref, g0_ref, beta0_ref,
               w1_ref, b1_ref, out_ref, u_acc, sum_acc, sq_acc, en_vmem,
               en_sem):
        e = pl.program_id(0)

        @pl.when(e == 0)
        def _init():
            u_acc[...] = jnp.zeros_like(u_acc)
            sum_acc[...] = jnp.zeros_like(sum_acc)
            sq_acc[...] = jnp.zeros_like(sq_acc)

        # edge_nodes is only needed by the last-step epilogue: keep it in HBM
        # for the whole E stream and DMA it once into a single-buffered VMEM
        # staging ref, overlapped with the second-to-last compute step.
        en_copy = pltpu.make_async_copy(en_hbm, en_vmem, en_sem)

        @pl.when(e == prefetch_step)
        def _prefetch_edge_nodes():
            en_copy.start()

        # ---- streamed per-tile work: MXU + VPU only (no masks, no XLU) ----
        # a = relu(feats @ W0 + b0).  Column dhp-1 of W0 is zero-padded and
        # b0[dhp-1] == 1, so a[:, dhp-1] == 1 and the inc @ a matmul below
        # accumulates node degrees into u_acc[:, dhp-1] for free.
        a = jnp.dot(feats_ref[...], w0_ref[...],
                    preferred_element_type=jnp.float32)
        a = jnp.maximum(a + b0_ref[...], 0.0)                  # [Et, Dhp] f32

        # BatchNorm running sums as (8, Dhp) sublane partials: pure VPU adds
        # every step.  Padded E rows contribute exactly relu(b0) each; the
        # correction and the single cross-sublane reduce happen in finalize.
        a3 = a.reshape(e_tile // 8, 8, dhp)
        sum_acc[...] += jnp.sum(a3, axis=0)
        sq_acc[...] += jnp.sum(a3 * a3, axis=0)

        # U += inc @ a  (bf16 MXU operands; padded E columns of inc are zero).
        u_acc[...] += jnp.dot(inc_ref[...], a.astype(jnp.bfloat16),
                              preferred_element_type=jnp.float32)

        @pl.when(e == last)
        def _finalize():
            en_copy.wait()

            relu_b0 = jnp.maximum(b0_ref[...], 0.0)            # [1, Dhp]
            s_sum = (jnp.sum(sum_acc[...], axis=0, keepdims=True)
                     - n_pad * relu_b0)
            s_sq = (jnp.sum(sq_acc[...], axis=0, keepdims=True)
                    - n_pad * relu_b0 * relu_b0)
            inv_e = 1.0 / e_true
            mean = s_sum * inv_e
            # TODO(synk): E[x^2]-E[x]^2 cancels for very large E / large-mean
            # activations; switch to a shifted / two-pass variance there.
            var = jnp.maximum(s_sq * inv_e - mean * mean, 0.0)
            s = g0_ref[...] * lax.rsqrt(var + bn_eps)          # gamma * rstd

            u = u_acc[...]                                     # [Np, Dhp] f32
            deg = u[:, dhp - 1:dhp]                            # node degrees
            # inc @ BN(a): per-column affine commutes with the left matmul.
            h_n = u * s + deg * (beta0_ref[...] - mean * s)
            # inc @ (BN(a) @ W1 + 1 b1^T) = h_n @ W1 + deg b1^T.  b1[kp-1]==1
            # and W1[:, kp-1]==0, so column kp-1 of t_n carries deg and the
            # row-sum normalizer falls out of the same edge_nodes matmul.
            t_n = (jnp.dot(h_n, w1_ref[...],
                           preferred_element_type=jnp.float32)
                   + deg * b1_ref[...])                        # [Np, Kp] f32

            en = en_vmem[...].astype(jnp.float32)              # [Bp, Np]
            r = jnp.dot(en, t_n, preferred_element_type=jnp.float32)
            row_sum = r[:, kp - 1:kp]                          # edge_nodes@deg
            inv = jnp.where(row_sum == 0.0, 0.0, 1.0 / row_sum)  # inf -> 0
            out_ref[...] = inv * r

    return kernel


def deep_edge_convolution(edge_nodes, inc_matrix, edge_feats, params,
                          *, e_tile=None, bn_eps=1e-5):
    """Fused DeepEdgeConvolution forward (num_layers=2, bias=True, training-
    mode BN).  Streams the E axis in VMEM-budget-sized lane tiles over a
    single 'arbitrary' grid axis with [N, Dh]-sized VMEM accumulators and a
    one-shot f32 epilogue on the last step."""
    w0, b0, g0, beta0, w1, b1 = params
    B, N = edge_nodes.shape
    E, D_in = edge_feats.shape
    D_hid = w0.shape[1]
    K = w1.shape[1]

    Bp = _round_up(B, 8)
    Np = _round_up(N, 128)
    Dip = _round_up(D_in, 128)
    # Guarantee >=1 zero-padded column in the hidden / output feature dims:
    # they carry the constant-1 "degree" / "row-sum" columns (via the padded
    # b0 / b1), so both quantities ride existing MXU matmuls for free.
    # TODO(synk): when D_hid is an exact multiple of 128 this costs an extra
    # 128-lane hidden block; a separate ones-column MXU pass would avoid it.
    Dhp = _round_up(D_hid + 1, 128)
    Kp = _round_up(K + 1, 128)

    budget = _vmem_budget_bytes()
    resident = _resident_vmem_bytes(Bp, Np, Dip, Dhp, Kp)
    if e_tile is None:
        e_tile, n_e = _pick_e_tile(E, Np, Dip, resident, budget)
    else:
        e_tile = _round_up(e_tile, 128)
        n_e = _cdiv(E, e_tile)
    Ep = n_e * e_tile

    need = resident + e_tile * 4 * (Dip + Np)
    if need > budget:
        # TODO(synk): tile the N axis (or spill u_acc / inc blocks to HBM) for
        # graphs where the [Np, Dhp] accumulator alone approaches the VMEM
        # budget (matters first on v7x's 64 MiB VMEM).
        raise ValueError(
            f"VMEM estimate {need >> 20} MiB exceeds budget {budget >> 20} "
            f"MiB; reduce e_tile (got {e_tile}) or tile the node axis.")

    def pad2(x, r, c, dtype):
        x = x.astype(jnp.float32)
        return jnp.pad(x, ((0, r - x.shape[0]),
                           (0, c - x.shape[1]))).astype(dtype)

    # bf16 for the big streamed MXU operands (edge_nodes / incidence are exact
    # 0/1 in bf16); the one-shot f32 epilogue keeps its params in f32.
    feats_p = pad2(edge_feats, Ep, Dip, jnp.bfloat16)
    inc_p = pad2(inc_matrix, Np, Ep, jnp.bfloat16)
    en_p = pad2(edge_nodes, Bp, Np, jnp.bfloat16)
    w0_p = pad2(w0, Dip, Dhp, jnp.bfloat16)
    w1_p = pad2(w1, Dhp, Kp, jnp.float32)
    b0_p = pad2(b0.reshape(1, -1), 1, Dhp, jnp.float32)
    b0_p = b0_p.at[0, Dhp - 1].set(1.0)        # degree column source
    g0_p = pad2(g0.reshape(1, -1), 1, Dhp, jnp.float32)
    beta0_p = pad2(beta0.reshape(1, -1), 1, Dhp, jnp.float32)
    b1_p = pad2(b1.reshape(1, -1), 1, Kp, jnp.float32)
    b1_p = b1_p.at[0, Kp - 1].set(1.0)         # row-sum column source

    kernel = _make_kernel(E, e_tile, Ep, Dhp, Kp, n_e, bn_eps)

    flops = 2 * (Ep * Dip * Dhp          # feats @ W0
                 + Np * Ep * Dhp         # inc @ a
                 + Np * Dhp * Kp         # h_n @ W1
                 + Bp * Np * Kp)         # edge_nodes @ t_n (incl. row-sum col)
    bytes_accessed = sum(int(x.size) * x.dtype.itemsize for x in
                         (feats_p, inc_p, en_p, w0_p, w1_p, b0_p, g0_p,
                          beta0_p, b1_p)) + Bp * Kp * 4

    out_p = pl.pallas_call(
        kernel,
        out_shape=jax.ShapeDtypeStruct((Bp, Kp), jnp.float32),
        grid_spec=pltpu.PrefetchScalarGridSpec(
            num_scalar_prefetch=0,
            grid=(n_e,),
            in_specs=[
                pl.BlockSpec((e_tile, Dip), lambda e: (e, 0)),   # edge_feats
                pl.BlockSpec((Np, e_tile), lambda e: (0, e)),    # incidence
                pl.BlockSpec(memory_space=pl.ANY),               # edge_nodes
                pl.BlockSpec((Dip, Dhp), lambda e: (0, 0)),      # W0
                pl.BlockSpec((1, Dhp), lambda e: (0, 0)),        # b0 (+deg col)
                pl.BlockSpec((1, Dhp), lambda e: (0, 0)),        # gamma
                pl.BlockSpec((1, Dhp), lambda e: (0, 0)),        # beta
                pl.BlockSpec((Dhp, Kp), lambda e: (0, 0)),       # W1 (f32)
                pl.BlockSpec((1, Kp), lambda e: (0, 0)),         # b1 (+rowsum)
            ],
            out_specs=pl.BlockSpec((Bp, Kp), lambda e: (0, 0)),
            scratch_shapes=[
                pltpu.VMEM((Np, Dhp), jnp.float32),   # U = inc @ a (+ degree)
                pltpu.VMEM((8, Dhp), jnp.float32),    # BN sum partials
                pltpu.VMEM((8, Dhp), jnp.float32),    # BN sum-of-sq partials
                pltpu.VMEM((Bp, Np), jnp.bfloat16),   # edge_nodes staging
                pltpu.SemaphoreType.DMA,              # edge_nodes DMA sem
            ]),
        compiler_params=pltpu.CompilerParams(
            # The single E axis carries shared accumulators -> "arbitrary".
            # TODO(synk): on v7x, split E across the two TensorCores (leading
            # parallel/core_map axis with per-core partial accumulators and a
            # tiny cross-core reduce) for up to ~2x.
            dimension_semantics=("arbitrary",),
            vmem_limit_bytes=budget),
        cost_estimate=pl.CostEstimate(flops=flops, transcendentals=Dhp,
                                      bytes_accessed=bytes_accessed),
    )(feats_p, inc_p, en_p, w0_p, b0_p, g0_p, beta0_p, w1_p, b1_p)

    return out_p[:B, :K]


def _reference(edge_nodes, inc_matrix, edge_feats, params):
    """Pure-JAX f32 reference with the original module's semantics."""
    w0, b0, g0, beta0, w1, b1 = params
    be = edge_nodes @ inc_matrix
    rs = be.sum(axis=1, keepdims=True)
    inv = jnp.where(rs == 0.0, 0.0, 1.0 / rs)
    be = be * inv
    h = jnp.maximum(edge_feats @ w0 + b0, 0.0)
    m = h.mean(axis=0, keepdims=True)
    v = jnp.mean((h - m) ** 2, axis=0, keepdims=True)
    h = (h - m) / jnp.sqrt(v + 1e-5) * g0 + beta0
    h = h @ w1 + b1
    return be @ h


if __name__ == "__main__":
    key = jax.random.PRNGKey(0)
    ks = jax.random.split(key, 10)

    # Small, module-consistent logical shapes (lane/sublane padding is an
    # internal detail of the wrapper).
    B, N, E = 8, 16, 300
    D_in, D_hid, D_out = 16, 32, 16

    # Dense stand-in for the torch.sparse incidence matrix [N, E]:
    # every edge touches exactly two distinct nodes.
    src = jax.random.randint(ks[0], (E,), 0, N)
    dst = (src + 1 + jax.random.randint(ks[1], (E,), 0, N - 1)) % N
    cols = jnp.arange(E)
    inc_matrix = jnp.zeros((N, E), jnp.float32)
    inc_matrix = inc_matrix.at[src, cols].set(1.0)
    inc_matrix = inc_matrix.at[dst, cols].set(1.0)

    # edge_nodes [B, N]: binary node indicators per batch element.
    edge_nodes = (jax.random.uniform(ks[2], (B, N)) < 0.3).astype(jnp.float32)
    edge_feats = jax.random.normal(ks[3], (E, D_in), jnp.float32)

    # Parameters (shapes as nn.Linear / nn.BatchNorm1d imply), stored as
    # [in, out] so the kernel computes h @ W + b directly.
    w0 = jax.random.normal(ks[4], (D_in, D_hid), jnp.float32) / jnp.sqrt(D_in)
    b0 = 0.01 * jax.random.normal(ks[5], (D_hid,), jnp.float32)
    g0 = 1.0 + 0.1 * jax.random.normal(ks[6], (D_hid,), jnp.float32)  # BN gamma
    beta0 = 0.05 * jax.random.normal(ks[7], (D_hid,), jnp.float32)    # BN beta
    w1 = jax.random.normal(ks[8], (D_hid, D_out), jnp.float32) / jnp.sqrt(D_hid)
    b1 = 0.01 * jax.random.normal(ks[9], (D_out,), jnp.float32)
    params = (w0, b0, g0, beta0, w1, b1)

    ref = _reference(edge_nodes, inc_matrix, edge_feats, params)

    # Auto-sized E tile (single grid step at this toy size) ...
    out_auto = jax.block_until_ready(
        deep_edge_convolution(edge_nodes, inc_matrix, edge_feats, params))
    # ... and a forced small tile so the multi-step accumulation, the
    # padded-tile BN correction and the late edge_nodes prefetch are exercised.
    out_multi = jax.block_until_ready(
        deep_edge_convolution(edge_nodes, inc_matrix, edge_feats, params,
                              e_tile=128))

    for out in (out_auto, out_multi):
        assert out.shape == (B, D_out), out.shape
        err = float(jnp.max(jnp.abs(out - ref)))
        # bf16 MXU operands + reassociated accumulation order -> ~1e-3 devs.
        assert jnp.allclose(out, ref, atol=2e-2, rtol=2e-2), \
            f"max abs err {err}"

    print("KERNEL_OK")
</pallas_src>

<mosaic_0001>
module attributes {stable_mosaic.version = 11 : i64} {
  func.func @kernel(%arg0: i32, %arg1: memref<384x128xbf16, #tpu.memory_space<vmem>>, %arg2: memref<128x384xbf16, #tpu.memory_space<vmem>>, %arg3: memref<8x128xbf16, #tpu.memory_space<any>>, %arg4: memref<128x128xbf16, #tpu.memory_space<vmem>>, %arg5: memref<1x128xf32, #tpu.memory_space<vmem>>, %arg6: memref<1x128xf32, #tpu.memory_space<vmem>>, %arg7: memref<1x128xf32, #tpu.memory_space<vmem>>, %arg8: memref<128x128xf32, #tpu.memory_space<vmem>>, %arg9: memref<1x128xf32, #tpu.memory_space<vmem>>, %arg10: memref<8x128xf32, #tpu.memory_space<vmem>>, %arg11: memref<128x128xf32, #tpu.memory_space<vmem>>, %arg12: memref<8x128xf32, #tpu.memory_space<vmem>>, %arg13: memref<8x128xf32, #tpu.memory_space<vmem>>, %arg14: memref<8x128xbf16, #tpu.memory_space<vmem>>, %arg15: memref<!tpu.dma_semaphore, #tpu.memory_space<semaphore_mem>>) attributes {dimension_semantics = [#tpu.dimension_semantics<arbitrary>], iteration_bounds = array<i64: 1>, scalar_prefetch = 0 : i64, scratch_operands = 5 : i64, tpu.core_type = #tpu.core_type<tc>, window_params = [{transform_indices = @transform_0, window_bounds = array<i64: 384, 128>}, {transform_indices = @transform_1, window_bounds = array<i64: 128, 384>}, {}, {pipeline_mode = #tpu.pipeline_mode<synchronous>, transform_indices = @transform_3, window_bounds = array<i64: 128, 128>}, {pipeline_mode = #tpu.pipeline_mode<synchronous>, transform_indices = @transform_4, window_bounds = array<i64: 1, 128>}, {pipeline_mode = #tpu.pipeline_mode<synchronous>, transform_indices = @transform_5, window_bounds = array<i64: 1, 128>}, {pipeline_mode = #tpu.pipeline_mode<synchronous>, transform_indices = @transform_6, window_bounds = array<i64: 1, 128>}, {pipeline_mode = #tpu.pipeline_mode<synchronous>, transform_indices = @transform_7, window_bounds = array<i64: 128, 128>}, {pipeline_mode = #tpu.pipeline_mode<synchronous>, transform_indices = @transform_8, window_bounds = array<i64: 1, 128>}, {pipeline_mode = #tpu.pipeline_mode<synchronous>, transform_indices = @transform_9, window_bounds = array<i64: 8, 128>}]} {
    %c0_i32 = arith.constant 0 : i32
    %0 = arith.cmpi eq, %arg0, %c0_i32 : i32
    %1 = arith.extui %0 : i1 to i32
    %c0_i32_0 = arith.constant 0 : i32
    %2 = arith.cmpi ne, %1, %c0_i32_0 : i32
    scf.if %2 {
      %cst_28 = arith.constant 0.000000e+00 : f32
      %33 = vector.broadcast %cst_28 : f32 to vector<128x128xf32>
      %c0_29 = arith.constant 0 : index
      %c0_30 = arith.constant 0 : index
      %34 = vector.load %arg11[%c0_29, %c0_30] : memref<128x128xf32, #tpu.memory_space<vmem>>, vector<128x128xf32>
      tpu.vector_store %arg11[%c0_29, %c0_30], %33 {strides = array<i32>} : memref<128x128xf32, #tpu.memory_space<vmem>>, vector<128x128xf32>,
      %cst_31 = arith.constant 0.000000e+00 : f32
      %35 = vector.broadcast %cst_31 : f32 to vector<8x128xf32>
      %c0_32 = arith.constant 0 : index
      %c0_33 = arith.constant 0 : index
      %36 = vector.load %arg12[%c0_32, %c0_33] : memref<8x128xf32, #tpu.memory_space<vmem>>, vector<8x128xf32>
      tpu.vector_store %arg12[%c0_32, %c0_33], %35 {strides = array<i32>} : memref<8x128xf32, #tpu.memory_space<vmem>>, vector<8x128xf32>,
      %cst_34 = arith.constant 0.000000e+00 : f32
      %37 = vector.broadcast %cst_34 : f32 to vector<8x128xf32>
      %c0_35 = arith.constant 0 : index
      %c0_36 = arith.constant 0 : index
      %38 = vector.load %arg13[%c0_35, %c0_36] : memref<8x128xf32, #tpu.memory_space<vmem>>, vector<8x128xf32>
      tpu.vector_store %arg13[%c0_35, %c0_36], %37 {strides = array<i32>} : memref<8x128xf32, #tpu.memory_space<vmem>>, vector<8x128xf32>,
    } else {
    }
    %c0_i32_1 = arith.constant 0 : i32
    %3 = arith.cmpi eq, %arg0, %c0_i32_1 : i32
    %4 = arith.extui %3 : i1 to i32
    %c0_i32_2 = arith.constant 0 : i32
    %5 = arith.cmpi ne, %4, %c0_i32_2 : i32
    scf.if %5 {
      tpu.enqueue_dma source(%arg3 : memref<8x128xbf16, #tpu.memory_space<any>>) target(%arg14 : memref<8x128xbf16, #tpu.memory_space<vmem>>) target_semaphore(%arg15 : memref<!tpu.dma_semaphore, #tpu.memory_space<semaphore_mem>>)
    } else {
    }
    %c0 = arith.constant 0 : index
    %c0_3 = arith.constant 0 : index
    %6 = vector.load %arg1[%c0, %c0_3] : memref<384x128xbf16, #tpu.memory_space<vmem>>, vector<384x128xbf16>
    %c0_4 = arith.constant 0 : index
    %c0_5 = arith.constant 0 : index
    %7 = vector.load %arg4[%c0_4, %c0_5] : memref<128x128xbf16, #tpu.memory_space<vmem>>, vector<128x128xbf16>
    %cst = arith.constant dense<0.000000e+00> : vector<384x128xf32>
    %8 = tpu.matmul %6, %7, %cst {dimension_numbers = #tpu.dot_dimension_numbers<[1], [0], [0], [1], [0, 0, 1, 1], [], []>} : vector<384x128xbf16>, vector<128x128xbf16>, vector<384x128xf32> -> vector<384x128xf32>
    %c0_6 = arith.constant 0 : index
    %c0_7 = arith.constant 0 : index
    %9 = vector.load %arg5[%c0_6, %c0_7] : memref<1x128xf32, #tpu.memory_space<vmem>>, vector<1x128xf32>
    %10 = vector.broadcast %9 : vector<1x128xf32> to vector<384x128xf32>
    %11 = arith.addf %8, %10 : vector<384x128xf32>
    %cst_8 = arith.constant 0.000000e+00 : f32
    %12 = vector.broadcast %cst_8 : f32 to vector<384x128xf32>
    %13 = arith.maximumf %11, %12 : vector<384x128xf32>
    %14 = vector.shape_cast %13 : vector<384x128xf32> to vector<48x8x128xf32>
    %c0_9 = arith.constant 0 : index
    %c0_10 = arith.constant 0 : index
    %15 = vector.load %arg12[%c0_9, %c0_10] : memref<8x128xf32, #tpu.memory_space<vmem>>, vector<8x128xf32>
    %cst_11 = arith.constant dense<0.000000e+00> : vector<8x128xf32>
    %16 = vector.multi_reduction <add>, %14, %cst_11 [0] : vector<48x8x128xf32> to vector<8x128xf32>
    %17 = arith.addf %15, %16 : vector<8x128xf32>
    %c0_12 = arith.constant 0 : index
    %c0_13 = arith.constant 0 : index
    %18 = vector.load %arg12[%c0_12, %c0_13] : memref<8x128xf32, #tpu.memory_space<vmem>>, vector<8x128xf32>
    tpu.vector_store %arg12[%c0_12, %c0_13], %17 {strides = array<i32>} : memref<8x128xf32, #tpu.memory_space<vmem>>, vector<8x128xf32>,
    %c0_14 = arith.constant 0 : index
    %c0_15 = arith.constant 0 : index
    %19 = vector.load %arg13[%c0_14, %c0_15] : memref<8x128xf32, #tpu.memory_space<vmem>>, vector<8x128xf32>
    %20 = arith.mulf %14, %14 : vector<48x8x128xf32>
    %cst_16 = arith.constant dense<0.000000e+00> : vector<8x128xf32>
    %21 = vector.multi_reduction <add>, %20, %cst_16 [0] : vector<48x8x128xf32> to vector<8x128xf32>
    %22 = arith.addf %19, %21 : vector<8x128xf32>
    %c0_17 = arith.constant 0 : index
    %c0_18 = arith.constant 0 : index
    %23 = vector.load %arg13[%c0_17, %c0_18] : memref<8x128xf32, #tpu.memory_space<vmem>>, vector<8x128xf32>
    tpu.vector_store %arg13[%c0_17, %c0_18], %22 {strides = array<i32>} : memref<8x128xf32, #tpu.memory_space<vmem>>, vector<8x128xf32>,
    %c0_19 = arith.constant 0 : index
    %c0_20 = arith.constant 0 : index
    %24 = vector.load %arg11[%c0_19, %c0_20] : memref<128x128xf32, #tpu.memory_space<vmem>>, vector<128x128xf32>
    %c0_21 = arith.constant 0 : index
    %c0_22 = arith.constant 0 : index
    %25 = vector.load %arg2[%c0_21, %c0_22] : memref<128x384xbf16, #tpu.memory_space<vmem>>, vector<128x384xbf16>
    %26 = arith.truncf %13 : vector<384x128xf32> to vector<384x128xbf16>
    %cst_23 = arith.constant dense<0.000000e+00> : vector<128x128xf32>
    %27 = tpu.matmul %25, %26, %cst_23 {dimension_numbers = #tpu.dot_dimension_numbers<[1], [0], [0], [1], [0, 0, 1, 1], [], []>} : vector<128x384xbf16>, vector<384x128xbf16>, vector<128x128xf32> -> vector<128x128xf32>
    %28 = arith.addf %24, %27 : vector<128x128xf32>
    %c0_24 = arith.constant 0 : index
    %c0_25 = arith.constant 0 : index
    %29 = vector.load %arg11[%c0_24, %c0_25] : memref<128x128xf32, #tpu.memory_space<vmem>>, vector<128x128xf32>
    tpu.vector_store %arg11[%c0_24, %c0_25], %28 {strides = array<i32>} : memref<128x128xf32, #tpu.memory_space<vmem>>, vector<128x128xf32>,
    %c0_i32_26 = arith.constant 0 : i32
    %30 = arith.cmpi eq, %arg0, %c0_i32_26 : i32
    %31 = arith.extui %30 : i1 to i32
    %c0_i32_27 = arith.constant 0 : i32
    %32 = arith.cmpi ne, %31, %c0_i32_27 : i32
    scf.if %32 {
      tpu.wait_dma2 semaphore(%arg15 : memref<!tpu.dma_semaphore, #tpu.memory_space<semaphore_mem>>) src(%arg3 : memref<8x128xbf16, #tpu.memory_space<any>>) dst(%arg14 : memref<8x128xbf16, #tpu.memory_space<vmem>>)
      %c0_28 = arith.constant 0 : index
      %c0_29 = arith.constant 0 : index
      %33 = vector.load %arg5[%c0_28, %c0_29] : memref<1x128xf32, #tpu.memory_space<vmem>>, vector<1x128xf32>
      %cst_30 = arith.constant 0.000000e+00 : f32
      %34 = vector.broadcast %cst_30 : f32 to vector<1x128xf32>
      %35 = arith.maximumf %33, %34 : vector<1x128xf32>
      %c0_31 = arith.constant 0 : index
      %c0_32 = arith.constant 0 : index
      %36 = vector.load %arg12[%c0_31, %c0_32] : memref<8x128xf32, #tpu.memory_space<vmem>>, vector<8x128xf32>
      %cst_33 = arith.constant dense<0.000000e+00> : vector<128xf32>
      %37 = vector.multi_reduction <add>, %36, %cst_33 [0] : vector<8x128xf32> to vector<128xf32>
      %38 = vector.shape_cast %37 : vector<128xf32> to vector<1x128xf32>
      %cst_34 = arith.constant 8.400000e+01 : f32
      %39 = vector.broadcast %cst_34 : f32 to vector<1x128xf32>
      %40 = arith.mulf %39, %35 : vector<1x128xf32>
      %41 = arith.subf %38, %40 : vector<1x128xf32>
      %c0_35 = arith.constant 0 : index
      %c0_36 = arith.constant 0 : index
      %42 = vector.load %arg13[%c0_35, %c0_36] : memref<8x128xf32, #tpu.memory_space<vmem>>, vector<8x128xf32>
      %cst_37 = arith.constant dense<0.000000e+00> : vector<128xf32>
      %43 = vector.multi_reduction <add>, %42, %cst_37 [0] : vector<8x128xf32> to vector<128xf32>
      %44 = vector.shape_cast %43 : vector<128xf32> to vector<1x128xf32>
      %cst_38 = arith.constant 8.400000e+01 : f32
      %45 = vector.broadcast %cst_38 : f32 to vector<1x128xf32>
      %46 = arith.mulf %45, %35 : vector<1x128xf32>
      %47 = arith.mulf %46, %35 : vector<1x128xf32>
      %48 = arith.subf %44, %47 : vector<1x128xf32>
      %cst_39 = arith.constant 0.00333333341 : f32
      %49 = vector.broadcast %cst_39 : f32 to vector<1x128xf32>
      %50 = arith.mulf %41, %49 : vector<1x128xf32>
      %cst_40 = arith.constant 0.00333333341 : f32
      %51 = vector.broadcast %cst_40 : f32 to vector<1x128xf32>
      %52 = arith.mulf %48, %51 : vector<1x128xf32>
      %53 = arith.mulf %50, %50 : vector<1x128xf32>
      %54 = arith.subf %52, %53 : vector<1x128xf32>
      %cst_41 = arith.constant 0.000000e+00 : f32
      %55 = vector.broadcast %cst_41 : f32 to vector<1x128xf32>
      %56 = arith.maximumf %54, %55 : vector<1x128xf32>
      %c0_42 = arith.constant 0 : index
      %c0_43 = arith.constant 0 : index
      %57 = vector.load %arg6[%c0_42, %c0_43] : memref<1x128xf32, #tpu.memory_space<vmem>>, vector<1x128xf32>
      %cst_44 = arith.constant 9.99999974E-6 : f32
      %58 = vector.broadcast %cst_44 : f32 to vector<1x128xf32>
      %59 = arith.addf %56, %58 : vector<1x128xf32>
      %60 = math.rsqrt %59 : vector<1x128xf32>
      %61 = arith.mulf %57, %60 : vector<1x128xf32>
      %c0_45 = arith.constant 0 : index
      %c0_46 = arith.constant 0 : index
      %62 = vector.load %arg11[%c0_45, %c0_46] : memref<128x128xf32, #tpu.memory_space<vmem>>, vector<128x128xf32>
      %63 = vector.extract_strided_slice %62 {offsets = [0, 127], sizes = [128, 1], strides = [1, 1]} : vector<128x128xf32> to vector<128x1xf32>
      %64 = vector.broadcast %61 : vector<1x128xf32> to vector<128x128xf32>
      %65 = arith.mulf %62, %64 : vector<128x128xf32>
      %c0_47 = arith.constant 0 : index
      %c0_48 = arith.constant 0 : index
      %66 = vector.load %arg7[%c0_47, %c0_48] : memref<1x128xf32, #tpu.memory_space<vmem>>, vector<1x128xf32>
      %67 = arith.mulf %50, %61 : vector<1x128xf32>
      %68 = arith.subf %66, %67 : vector<1x128xf32>
      %69 = vector.broadcast %63 : vector<128x1xf32> to vector<128x128xf32>
      %70 = vector.broadcast %68 : vector<1x128xf32> to vector<128x128xf32>
      %71 = arith.mulf %69, %70 : vector<128x128xf32>
      %72 = arith.addf %65, %71 : vector<128x128xf32>
      %c0_49 = arith.constant 0 : index
      %c0_50 = arith.constant 0 : index
      %73 = vector.load %arg8[%c0_49, %c0_50] : memref<128x128xf32, #tpu.memory_space<vmem>>, vector<128x128xf32>
      %cst_51 = arith.constant dense<0.000000e+00> : vector<128x128xf32>
      %74 = tpu.matmul %72, %73, %cst_51 {dimension_numbers = #tpu.dot_dimension_numbers<[1], [0], [0], [1], [0, 0, 1, 1], [], []>} : vector<128x128xf32>, vector<128x128xf32>, vector<128x128xf32> -> vector<128x128xf32>
      %c0_52 = arith.constant 0 : index
      %c0_53 = arith.constant 0 : index
      %75 = vector.load %arg9[%c0_52, %c0_53] : memref<1x128xf32, #tpu.memory_space<vmem>>, vector<1x128xf32>
      %76 = vector.broadcast %63 : vector<128x1xf32> to vector<128x128xf32>
      %77 = vector.broadcast %75 : vector<1x128xf32> to vector<128x128xf32>
      %78 = arith.mulf %76, %77 : vector<128x128xf32>
      %79 = arith.addf %74, %78 : vector<128x128xf32>
      %c0_54 = arith.constant 0 : index
      %c0_55 = arith.constant 0 : index
      %80 = vector.load %arg14[%c0_54, %c0_55] : memref<8x128xbf16, #tpu.memory_space<vmem>>, vector<8x128xbf16>
      %81 = arith.extf %80 : vector<8x128xbf16> to vector<8x128xf32>
      %cst_56 = arith.constant dense<0.000000e+00> : vector<8x128xf32>
      %82 = tpu.matmul %81, %79, %cst_56 {dimension_numbers = #tpu.dot_dimension_numbers<[1], [0], [0], [1], [0, 0, 1, 1], [], []>} : vector<8x128xf32>, vector<128x128xf32>, vector<8x128xf32> -> vector<8x128xf32>
      %83 = vector.extract_strided_slice %82 {offsets = [0, 127], sizes = [8, 1], strides = [1, 1]} : vector<8x128xf32> to vector<8x1xf32>
      %cst_57 = arith.constant 0.000000e+00 : f32
      %84 = vector.broadcast %cst_57 : f32 to vector<8x1xf32>
      %85 = arith.cmpf oeq, %83, %84 : vector<8x1xf32>
      %cst_58 = arith.constant 1.000000e+00 : f32
      %86 = vector.broadcast %cst_58 : f32 to vector<8x1xf32>
      %87 = arith.divf %86, %83 : vector<8x1xf32>
      %cst_59 = arith.constant 0.000000e+00 : f32
      %88 = vector.broadcast %cst_59 : f32 to vector<8x1xf32>
      %89 = arith.select %85, %88, %87 : vector<8x1xi1>, vector<8x1xf32>
      %90 = vector.broadcast %89 : vector<8x1xf32> to vector<8x128xf32>
      %91 = arith.mulf %90, %82 : vector<8x128xf32>
      %c0_60 = arith.constant 0 : index
      %c0_61 = arith.constant 0 : index
      %92 = vector.load %arg10[%c0_60, %c0_61] : memref<8x128xf32, #tpu.memory_space<vmem>>, vector<8x128xf32>
      tpu.vector_store %arg10[%c0_60, %c0_61], %91 {strides = array<i32>} : memref<8x128xf32, #tpu.memory_space<vmem>>, vector<8x128xf32>,
    } else {
    }
    return
  }
  func.func @transform_0(%arg0: i32) -> (i32, i32) {
    %c0_i32 = arith.constant 0 : i32
    %c0_i32_0 = arith.constant 0 : i32
    return %arg0, %c0_i32 : i32, i32
  }
  func.func @transform_1(%arg0: i32) -> (i32, i32) {
    %c0_i32 = arith.constant 0 : i32
    %c0_i32_0 = arith.constant 0 : i32
    return %c0_i32, %arg0 : i32, i32
  }
  func.func @transform_3(%arg0: i32) -> (i32, i32) {
    %c0_i32 = arith.constant 0 : i32
    %c0_i32_0 = arith.constant 0 : i32
    %c0_i32_1 = arith.constant 0 : i32
    return %c0_i32, %c0_i32_0 : i32, i32
  }
  func.func @transform_4(%arg0: i32) -> (i32, i32) {
    %c0_i32 = arith.constant 0 : i32
    %c0_i32_0 = arith.constant 0 : i32
    %c0_i32_1 = arith.constant 0 : i32
    return %c0_i32, %c0_i32_0 : i32, i32
  }
  func.func @transform_5(%arg0: i32) -> (i32, i32) {
    %c0_i32 = arith.constant 0 : i32
    %c0_i32_0 = arith.constant 0 : i32
    %c0_i32_1 = arith.constant 0 : i32
    return %c0_i32, %c0_i32_0 : i32, i32
  }
  func.func @transform_6(%arg0: i32) -> (i32, i32) {
    %c0_i32 = arith.constant 0 : i32
    %c0_i32_0 = arith.constant 0 : i32
    %c0_i32_1 = arith.constant 0 : i32
    return %c0_i32, %c0_i32_0 : i32, i32
  }
  func.func @transform_7(%arg0: i32) -> (i32, i32) {
    %c0_i32 = arith.constant 0 : i32
    %c0_i32_0 = arith.constant 0 : i32
    %c0_i32_1 = arith.constant 0 : i32
    return %c0_i32, %c0_i32_0 : i32, i32
  }
  func.func @transform_8(%arg0: i32) -> (i32, i32) {
    %c0_i32 = arith.constant 0 : i32
    %c0_i32_0 = arith.constant 0 : i32
    %c0_i32_1 = arith.constant 0 : i32
    return %c0_i32, %c0_i32_0 : i32, i32
  }
  func.func @transform_9(%arg0: i32) -> (i32, i32) {
    %c0_i32 = arith.constant 0 : i32
    %c0_i32_0 = arith.constant 0 : i32
    %c0_i32_1 = arith.constant 0 : i32
    return %c0_i32, %c0_i32_0 : i32, i32
  }
}

</mosaic_0001>

<bundles_post_ra>
// kernel: tpu_custom_call.1
= control target key start
LH: loop header
LB: loop body
LE: loop exit
PB: predicated region body
PF: predicated region fallthrough
CT: control target
= control target key end

     0   :  { %14 = vsyncpa [#allocation8], 0  ;;  %s2926_s0 = inlined_call_operand.hbm [shape: bf16[384,128], index: 0, kind: input, shape index: {}]   ;;  %s2927_s1 = inlined_call_operand.hbm [shape: bf16[128,384], index: 1, kind: input, shape index: {}]   ;;  %s2928_s2 = inlined_call_operand.vmem [shape: bf16[8,128], index: 2, kind: input, shape index: {}]   ;;  %s2929_s3 = inlined_call_operand.hbm [shape: bf16[128,128], index: 3, kind: input, shape index: {}]   ;;  %s2930_s4 = inlined_call_operand.vmem [shape: f32[1,128], index: 4, kind: input, shape index: {}]   ;;  %s2931_s5 = inlined_call_operand.vmem [shape: f32[1,128], index: 5, kind: input, shape index: {}]   ;;  %s2932_s6 = inlined_call_operand.vmem [shape: f32[1,128], index: 6, kind: input, shape index: {}]   ;;  %s2933_s7 = inlined_call_operand.hbm [shape: f32[128,128], index: 7, kind: input, shape index: {}]   ;;  %s2934_s8 = inlined_call_operand.vmem [shape: f32[1,128], index: 8, kind: input, shape index: {}]   ;;  %s2935_s9 = inlined_call_operand.hbm [shape: f32[8,128], index: 9, kind: output, shape index: {}]  }
   0x1   :  { %15 = vsyncpa [#allocation11], 0 }
   0x2   :  { %16 = vsyncpa [#allocation14], 0 }
   0x3   :  { %17 = vsyncpa [#allocation9], 0  ;;  %s2426_s30 = smov [#allocation10]   ;;  %s2306_s13 = scalar_lea.hbm %s2927_s1, 3072 }
   0x4   :  { %s35_s10 = sshll.u32 %s2426_s30, 4  ;;  %p2307_p0 = scmp.ne.s32.totalorder %s2927_s1, %s2306_s13  ;;  %s36_s10 = int_to_ptr.vmem [resolvable:$true] %s35_s10 }
   0x5   :  { %p2310_p1 = scmp.lt.u32.totalorder %s2306_s13, %s2927_s1 }
   0x7   :  { %p2312_p2 = pnand %p2310_p1, %p2307_p0 }
   0x9   :  { %2315 = shalt.err (!%p2312_p2)
}
   0xa   :  { %s2316_s18 = scalar_lea.vmem %s36_s10, 3072  ;;  %p2321_p4 = scmp.lt.s32.totalorder %s36_s10, %s36_s10 }
   0xb   :  { %p2317_p3 = scmp.ne.s32.totalorder %s36_s10, %s2316_s18  ;;  %p2322_p5 = scmp.lt.s32.totalorder %s2316_s18, %s2316_s18 }
   0xd   :  { %p2323_p6 = por %p2322_p5, %p2321_p4 }
   0xf   :  { %p2324_p7 = pnand %p2323_p6, %p2317_p3 }
  0x11   :  { %2327 = shalt.err (!%p2324_p7)
}
  0x12   :  { %s2427_s19 = smov 192   ;;  %s2428_s20 = smov 12  }
  0x13   :  { %41 = dma.hbm_to_vmem [thread:$0]  %s2927_s1, 3072, %s36_s10, [#allocation11], %s2427_s19, %s2427_s19, %s2428_s20  }
  0x14   :  { %s2429_s23 = smov [#allocation7]   ;;  %s2328_s27 = scalar_lea.hbm %s2926_s0, 3072 }
  0x15   :  { %s23_s24 = sshll.u32 %s2429_s23, 4  ;;  %p2329_p8 = scmp.ne.s32.totalorder %s2926_s0, %s2328_s27  ;;  %s24_s24 = int_to_ptr.vmem [resolvable:$true] %s23_s24 }
  0x16   :  { %p2332_p9 = scmp.lt.u32.totalorder %s2328_s27, %s2926_s0 }
  0x18   :  { %p2334_p10 = pnand %p2332_p9, %p2329_p8 }
  0x1a   :  { %2337 = shalt.err (!%p2334_p10)
}
  0x1b   :  { %s2338_s12 = scalar_lea.vmem %s24_s24, 3072  ;;  %p2343_p12 = scmp.lt.s32.totalorder %s24_s24, %s24_s24 }
  0x1c   :  { %p2339_p11 = scmp.ne.s32.totalorder %s24_s24, %s2338_s12  ;;  %p2344_p13 = scmp.lt.s32.totalorder %s2338_s12, %s2338_s12 }
  0x1e   :  { %p2345_p0 = por %p2344_p13, %p2343_p12 }
  0x20   :  { %p2346_p1 = pnand %p2345_p0, %p2339_p11 }
  0x22   :  { %2349 = shalt.err (!%p2346_p1)
}
  0x23   :  { %s2430_s1 = smov 64   ;;  %s2431_s10 = smov 4  }
  0x24   :  { %29 = dma.hbm_to_vmem [thread:$0]  %s2926_s0, 3072, %s24_s24, [#allocation8], %s2430_s1, %s2430_s1, %s2431_s10  }
  0x25   :  { %s2432_s15 = smov [#allocation12]   ;;  %s2433_s17 = smov [#allocation13]  }
  0x26   :  { %s47_s16 = sshll.u32 %s2432_s15, 4  ;;  %s65_s18 = sshll.u32 %s2433_s17, 4  ;;  %s48_s16 = int_to_ptr.vmem [resolvable:$true] %s47_s16  ;;  %s2515_s18 = int_to_ptr.vmem [resolvable:$true] %s65_s18 }
  0x27   :  { %s2350_s21 = scalar_lea.hbm %s2929_s3, 1024 }
  0x28   :  { %p2351_p2 = scmp.ne.s32.totalorder %s2929_s3, %s2350_s21  ;;  %p2354_p3 = scmp.lt.u32.totalorder %s2350_s21, %s2929_s3 }
  0x2a   :  { %p2356_p4 = pnand %p2354_p3, %p2351_p2 }
  0x2c   :  { %2359 = shalt.err (!%p2356_p4)
}
  0x2d   :  { %s2360_s0 = scalar_lea.vmem %s48_s16, 1024  ;;  %p2365_p6 = scmp.lt.s32.totalorder %s48_s16, %s48_s16 }
  0x2e   :  { %p2361_p5 = scmp.ne.s32.totalorder %s48_s16, %s2360_s0  ;;  %p2366_p7 = scmp.lt.s32.totalorder %s2360_s0, %s2360_s0 }
  0x30   :  { %p2367_p8 = por %p2366_p7, %p2365_p6 }
  0x32   :  { %p2368_p9 = pnand %p2367_p8, %p2361_p5 }
  0x34   :  { %2371 = shalt.err (!%p2368_p9)
}
  0x35   :  { %53 = dma.hbm_to_vmem [thread:$0]  %s2929_s3, 1024, %s48_s16, [#allocation11], %s2430_s1, %s2430_s1, %s2431_s10  }
  0x36   :  { %s2372_s30 = scalar_lea.hbm %s2933_s7, 2048 }
  0x37   :  { %p2373_p10 = scmp.ne.s32.totalorder %s2933_s7, %s2372_s30  ;;  %p2376_p11 = scmp.lt.u32.totalorder %s2372_s30, %s2933_s7 }
  0x39   :  { %p2378_p12 = pnand %p2376_p11, %p2373_p10 }
  0x3b   :  { %2381 = shalt.err (!%p2378_p12)
}
  0x3c   :  { %s2382_s15 = scalar_lea.vmem %s2515_s18, 2048  ;;  %p2387_p0 = scmp.lt.s32.totalorder %s2515_s18, %s2515_s18 }
  0x3d   :  { %p2383_p13 = scmp.ne.s32.totalorder %s2515_s18, %s2382_s15  ;;  %p2388_p1 = scmp.lt.s32.totalorder %s2382_s15, %s2382_s15 }
  0x3f   :  { %p2389_p2 = por %p2388_p1, %p2387_p0 }
  0x41   :  { %p2390_p3 = pnand %p2389_p2, %p2383_p13 }
  0x43   :  { %2393 = shalt.err (!%p2390_p3)
}
  0x44   :  { %s2434_s3 = smov 128   ;;  %s2435_s1 = smov 8  }
  0x45   :  { %71 = dma.hbm_to_vmem [thread:$0]  %s2933_s7, 2048, %s2515_s18, [#allocation14], %s2434_s3, %s2434_s3, %s2435_s1  }
  0x46   :  { %2416 = dma.done.wait [#allocation8], 3072  }
  0x47   :  { %2417 = vsyncadd [#allocation8], 4294964224 }
  0x48   :  { %2418 = dma.done.wait [#allocation11], 4096  }
  0x49   :  { %2419 = vsyncadd [#allocation11], 4294963200 }
  0x4a   :  { %2420 = dma.done.wait [#allocation14], 2048  }
  0x4b   :  { %2421 = vsyncadd [#allocation14], 4294965248  ;;  %v126_v0 = vld [vmem:[%s2928_s2] sm:$0xf] }
  0x4c   :  { %127 = vst [vmem:[#allocation5] sm:$0xf] %v126_v0 }
  0x4d   :  { %152 = vsyncadd [#allocation6], 64  ;;  %v2236_v1 = vld [vmem:[#allocation12] sm:$0xff]   ;;  %v2237_v2 = vld [vmem:[#allocation12 + $0x8] sm:$0xff]  }
  0x4e   :  { %1978 = vmatprep.subr.bf16.mxu0 %v2236_v1  ;;  %v2238_v3 = vld [vmem:[#allocation12 + $0x10] sm:$0xff]   ;;  %v2239_v4 = vld [vmem:[#allocation12 + $0x18] sm:$0xff]   ;;  %v2244_v5 = vld [vmem:[#allocation7] sm:$0xff]  }
  0x4f   :  { %1979 = vmatpush3.bf16.msra.mxu0 %v2236_v1  ;;  %1994 = vmatprep.mubr.bf16.mxu0 %v2244_v5  ;;  %v2240_v6 = vld [vmem:[#allocation12 + $0x20] sm:$0xff]   ;;  %v2241_v7 = vld [vmem:[#allocation12 + $0x28] sm:$0xff]   ;;  %v2242_v8 = vld [vmem:[#allocation12 + $0x30] sm:$0xff]  }
  0x50   :  { %1980 = vmatprep.subr.bf16.mxu0 %v2237_v2  ;;  %v2243_v9 = vld [vmem:[#allocation12 + $0x38] sm:$0xff]   ;;  %v2245_v10 = vld [vmem:[#allocation7 + $0x8] sm:$0xff]   ;;  %v2246_v11 = vld [vmem:[#allocation7 + $0x10] sm:$0xff]  }
  0x51   :  { %v2247_v12 = vld [vmem:[#allocation7 + $0x18] sm:$0xff]   ;;  %v2248_v13 = vld [vmem:[#allocation7 + $0x20] sm:$0xff]   ;;  %v2249_v14 = vld [vmem:[#allocation7 + $0x28] sm:$0xff]  }
  0x52   :  { %v2250_v15 = vld [vmem:[#allocation7 + $0x30] sm:$0xff]   ;;  %v2251_v16 = vld [vmem:[#allocation7 + $0x38] sm:$0xff]   ;;  %v2252_v17 = vld [vmem:[#allocation7 + $0x40] sm:$0xff]  }
  0x53   :  { %1981 = vmatpush3.bf16.msra.mxu0 %v2237_v2  ;;  %v2253_v18 = vld [vmem:[#allocation7 + $0x48] sm:$0xff]   ;;  %v2254_v19 = vld [vmem:[#allocation7 + $0x50] sm:$0xff]   ;;  %v2255_v20 = vld [vmem:[#allocation7 + $0x58] sm:$0xff]  }
  0x54   :  { %1982 = vmatprep.subr.bf16.mxu0 %v2238_v3  ;;  %v2256_v21 = vld [vmem:[#allocation7 + $0x60] sm:$0xff]   ;;  %v2257_v22 = vld [vmem:[#allocation7 + $0x68] sm:$0xff]   ;;  %v2258_v23 = vld [vmem:[#allocation7 + $0x70] sm:$0xff]  }
  0x55   :  { %v2259_v24 = vld [vmem:[#allocation7 + $0x78] sm:$0xff]   ;;  %v2260_v25 = vld [vmem:[#allocation7 + $0x80] sm:$0xff]   ;;  %v2261_v26 = vld [vmem:[#allocation7 + $0x88] sm:$0xff]  }
  0x56   :  { %v2262_v27 = vld [vmem:[#allocation7 + $0x90] sm:$0xff]   ;;  %v2263_v28 = vld [vmem:[#allocation7 + $0x98] sm:$0xff]   ;;  %v2264_v29 = vld [vmem:[#allocation7 + $0xa0] sm:$0xff]  }
  0x57   :  { %1983 = vmatpush3.bf16.msra.mxu0 %v2238_v3  ;;  %v2265_v30 = vld [vmem:[#allocation7 + $0xa8] sm:$0xff]   ;;  %v2266_v31 = vld [vmem:[#allocation7 + $0xb0] sm:$0xff]   ;;  %v2267_v32 = vld [vmem:[#allocation7 + $0xb8] sm:$0xff]  }
  0x58   :  { %1984 = vmatprep.subr.bf16.mxu0 %v2239_v4  ;;  %v2270_v33 = vld [vmem:[#allocation10 + $0x4] ss:$12 sps:$4 sm:$0xff]   ;;  %v2552_v34 = vld [vmem:[%s2930_s4] ss:$0 sm:$0xff] }
  0x59   :  { %1069 = vmatprep.mubr.bf16.mxu1 %v2270_v33 }
  0x5b   :  { %1985 = vmatpush3.bf16.msra.mxu0 %v2239_v4 }
  0x5c   :  { %1986 = vmatprep.subr.bf16.mxu0 %v2240_v6 }
  0x5f   :  { %1987 = vmatpush3.bf16.msra.mxu0 %v2240_v6 }
  0x60   :  { %1988 = vmatprep.subr.bf16.mxu0 %v2241_v7 }
  0x63   :  { %1989 = vmatpush3.bf16.msra.mxu0 %v2241_v7 }
  0x64   :  { %1990 = vmatprep.subr.bf16.mxu0 %v2242_v8 }
  0x67   :  { %1991 = vmatpush3.bf16.msra.mxu0 %v2242_v8 }
  0x68   :  { %1992 = vmatprep.subr.bf16.mxu0 %v2243_v9 }
  0x6b   :  { %1993 = vmatpush3.bf16.msra.mxu0 %v2243_v9 }
  0x6e   :  { %1995 = vmatmul.mubr.bf16.vlgmr.msra.gmra.mrb[0].mxu0 %v2245_v10 }
  0x6f   :  { %1998 = vmatprep.mubr.bf16.mxu0 %v2246_v11 }
  0x76   :  { %1999 = vmatmul.mubr.bf16.gmra.mrb[4].mxu0 %v2247_v12 }
  0x77   :  { %2002 = vmatprep.mubr.bf16.mxu0 %v2248_v13 }
  0x7e   :  { %2003 = vmatmul.mubr.bf16.gmra.mrb[8].mxu0 %v2249_v14 }
  0x7f   :  { %2006 = vmatprep.mubr.bf16.mxu0 %v2250_v15 }
  0x86   :  { %2007 = vmatmul.mubr.bf16.gmra.mrb[12].mxu0 %v2251_v16 }
  0x87   :  { %2010 = vmatprep.mubr.bf16.mxu0 %v2252_v17 }
  0x8e   :  { %2011 = vmatmul.mubr.bf16.gmra.mrb[16].mxu0 %v2253_v18 }
  0x8f   :  { %2014 = vmatprep.mubr.bf16.mxu0 %v2254_v19 }
  0x96   :  { %2015 = vmatmul.mubr.bf16.gmra.mrb[20].mxu0 %v2255_v20 }
  0x97   :  { %2018 = vmatprep.mubr.bf16.mxu0 %v2256_v21 }
  0x9e   :  { %2019 = vmatmul.mubr.bf16.gmra.mrb[24].mxu0 %v2257_v22 }
  0x9f   :  { %2022 = vmatprep.mubr.bf16.mxu0 %v2258_v23 }
  0xa6   :  { %2023 = vmatmul.mubr.bf16.gmra.mrb[28].mxu0 %v2259_v24 }
  0xa7   :  { %2026 = vmatprep.mubr.bf16.mxu0 %v2260_v25 }
  0xae   :  { %2027 = vmatmul.mubr.bf16.gmra.mrb[32].mxu0 %v2261_v26 }
  0xaf   :  { %2030 = vmatprep.mubr.bf16.mxu0 %v2262_v27 }
  0xb6   :  { %2031 = vmatmul.mubr.bf16.gmra.mrb[36].mxu0 %v2263_v28 }
  0xb7   :  { %2034 = vmatprep.mubr.bf16.mxu0 %v2264_v29 }
  0xbe   :  { %2035 = vmatmul.mubr.bf16.gmra.mrb[40].mxu0 %v2265_v30 }
  0xbf   :  { %2038 = vmatprep.mubr.bf16.mxu0 %v2266_v31 }
  0xc6   :  { %2039 = vmatmul.mubr.bf16.gmra.mrb[44].mxu0 %v2267_v32 }
 0x141   :  { %v1996_v35 = vpop.f32.mrb[0].mxu0 }
 0x142   :  { %v459_v36 = vadd.f32 %v1996_v35, %v2552_v34  ;;  %v450_v37 = vpop.f32.mrb[1].mxu0 }
 0x143   :  { %v451_v38 = vadd.f32 %v2552_v34, %v450_v37  ;;  %v1997_v39 = vpop.f32.mrb[2].mxu0 }
 0x144   :  { %v462_v40 = vadd.f32 %v1997_v39, %v2552_v34  ;;  %v453_v41 = vpop.f32.mrb[3].mxu0  ;;  %v2560_v44 = vmax.f32 %v459_v36, 0.0 }
 0x145   :  { %v2557_v42 = vmax.f32 %v451_v38, 0.0  ;;  %v454_v43 = vadd.f32 %v2552_v34, %v453_v41 }
 0x146   :  { %v2562_v45 = vmax.f32 %v462_v40, 0.0  ;;  %v742_v55 = vmul.f32 %v2560_v44, %v2560_v44 }
 0x147   :  { %v2564_v46 = vmax.f32 %v454_v43, 0.0  ;;  %v740_v48 = vmul.f32 %v2557_v42, %v2557_v42 }
 0x148   :  { %v886_v47 = vpack.c.bf16 %v2562_v45, %v2560_v44  ;;  %v743_v60 = vmul.f32 %v2562_v45, %v2562_v45 }
 0x149   :  { %v690_v49 = vadd.f32 %v2564_v46, %v2557_v42  ;;  %v741_v50 = vmul.f32 %v2564_v46, %v2564_v46  ;;  %v2000_v51 = vpop.f32.mrb[4].mxu0  ;;  %v885_v52 = vpack.c.bf16 %v2564_v46, %v2557_v42 }
 0x14a   :  { %v475_v53 = vadd.f32 %v2000_v51, %v2552_v34  ;;  %v466_v54 = vpop.f32.mrb[5].mxu0 }
 0x14b   :  { %v691_v56 = vadd.f32 %v690_v49, %v2560_v44  ;;  %v788_v57 = vadd.f32 %v741_v50, %v740_v48  ;;  %v467_v58 = vadd.f32 %v2552_v34, %v466_v54  ;;  %v2001_v59 = vpop.f32.mrb[6].mxu0 }
 0x14c   :  { %v478_v61 = vadd.f32 %v2001_v59, %v2552_v34  ;;  %v469_v62 = vpop.f32.mrb[7].mxu0  ;;  %v2588_v3 = vmax.f32 %v475_v53, 0.0 }
 0x14d   :  { %v789_v63 = vadd.f32 %v788_v57, %v742_v55  ;;  %v2584_v0 = vmax.f32 %v467_v58, 0.0  ;;  %v692_v1 = vadd.f32 %v691_v56, %v2562_v45  ;;  %v470_v2 = vadd.f32 %v2552_v34, %v469_v62 }
 0x14e   :  { %v2590_v4 = vmax.f32 %v478_v61, 0.0  ;;  %v746_v17 = vmul.f32 %v2588_v3, %v2588_v3 }
 0x14f   :  { %v693_v5 = vadd.f32 %v692_v1, %v2584_v0  ;;  %v744_v6 = vmul.f32 %v2584_v0, %v2584_v0  ;;  %v790_v7 = vadd.f32 %v789_v63, %v743_v60  ;;  %v2595_v8 = vmax.f32 %v470_v2, 0.0 }
 0x150   :  { %v888_v9 = vpack.c.bf16 %v2590_v4, %v2588_v3  ;;  %v747_v22 = vmul.f32 %v2590_v4, %v2590_v4 }
 0x151   :  { %v791_v10 = vadd.f32 %v790_v7, %v744_v6  ;;  %v694_v11 = vadd.f32 %v693_v5, %v2595_v8  ;;  %v745_v12 = vmul.f32 %v2595_v8, %v2595_v8  ;;  %v2004_v13 = vpop.f32.mrb[8].mxu0  ;;  %v887_v14 = vpack.c.bf16 %v2595_v8, %v2584_v0 }
 0x152   :  { %v491_v15 = vadd.f32 %v2004_v13, %v2552_v34  ;;  %v482_v16 = vpop.f32.mrb[9].mxu0 }
 0x153   :  { %v695_v18 = vadd.f32 %v694_v11, %v2588_v3  ;;  %v792_v19 = vadd.f32 %v791_v10, %v745_v12  ;;  %v483_v20 = vadd.f32 %v2552_v34, %v482_v16  ;;  %v2005_v21 = vpop.f32.mrb[10].mxu0 }
 0x154   :  { %v494_v23 = vadd.f32 %v2005_v21, %v2552_v34  ;;  %v485_v24 = vpop.f32.mrb[11].mxu0  ;;  %v2616_v29 = vmax.f32 %v491_v15, 0.0 }
 0x155   :  { %v793_v25 = vadd.f32 %v792_v19, %v746_v17  ;;  %v2612_v26 = vmax.f32 %v483_v20, 0.0  ;;  %v696_v27 = vadd.f32 %v695_v18, %v2590_v4  ;;  %v486_v28 = vadd.f32 %v2552_v34, %v485_v24 }
 0x156   :  { %v2618_v30 = vmax.f32 %v494_v23, 0.0  ;;  %v750_v49 = vmul.f32 %v2616_v29, %v2616_v29 }
 0x157   :  { %v697_v31 = vadd.f32 %v696_v27, %v2612_v26  ;;  %v748_v32 = vmul.f32 %v2612_v26, %v2612_v26  ;;  %v794_v33 = vadd.f32 %v793_v25, %v747_v22  ;;  %v2623_v35 = vmax.f32 %v486_v28, 0.0 }
 0x158   :  { %v890_v36 = vpack.c.bf16 %v2618_v30, %v2616_v29  ;;  %v751_v55 = vmul.f32 %v2618_v30, %v2618_v30 }
 0x159   :  { %v795_v37 = vadd.f32 %v794_v33, %v748_v32  ;;  %v698_v38 = vadd.f32 %v697_v31, %v2623_v35  ;;  %v749_v39 = vmul.f32 %v2623_v35, %v2623_v35  ;;  %v2008_v40 = vpop.f32.mrb[12].mxu0  ;;  %v889_v41 = vpack.c.bf16 %v2623_v35, %v2612_v26 }
 0x15a   :  { %v507_v43 = vadd.f32 %v2008_v40, %v2552_v34  ;;  %v498_v48 = vpop.f32.mrb[13].mxu0 }
 0x15b   :  { %v699_v50 = vadd.f32 %v698_v38, %v2616_v29  ;;  %v796_v51 = vadd.f32 %v795_v37, %v749_v39  ;;  %v499_v53 = vadd.f32 %v2552_v34, %v498_v48  ;;  %v2009_v54 = vpop.f32.mrb[14].mxu0 }
 0x15c   :  { %v510_v56 = vadd.f32 %v2009_v54, %v2552_v34  ;;  %v501_v57 = vpop.f32.mrb[15].mxu0  ;;  %v2644_v62 = vmax.f32 %v507_v43, 0.0 }
 0x15d   :  { %v797_v58 = vadd.f32 %v796_v51, %v750_v49  ;;  %v2640_v59 = vmax.f32 %v499_v53, 0.0  ;;  %v700_v60 = vadd.f32 %v699_v50, %v2618_v30  ;;  %v502_v61 = vadd.f32 %v2552_v34, %v501_v57 }
 0x15e   :  { %v2646_v63 = vmax.f32 %v510_v56, 0.0  ;;  %v754_v18 = vmul.f32 %v2644_v62, %v2644_v62 }
 0x15f   :  { %v701_v1 = vadd.f32 %v700_v60, %v2640_v59  ;;  %v752_v2 = vmul.f32 %v2640_v59, %v2640_v59  ;;  %v798_v5 = vadd.f32 %v797_v58, %v751_v55  ;;  %v2651_v6 = vmax.f32 %v502_v61, 0.0 }
 0x160   :  { %v892_v7 = vpack.c.bf16 %v2646_v63, %v2644_v62  ;;  %v755_v23 = vmul.f32 %v2646_v63, %v2646_v63 }
 0x161   :  { %v799_v10 = vadd.f32 %v798_v5, %v752_v2  ;;  %v702_v11 = vadd.f32 %v701_v1, %v2651_v6  ;;  %v753_v12 = vmul.f32 %v2651_v6, %v2651_v6  ;;  %v2012_v13 = vpop.f32.mrb[16].mxu0  ;;  %v891_v15 = vpack.c.bf16 %v2651_v6, %v2640_v59  ;;  %v2271_v59 = vld [vmem:[#allocation10 + $0x1c] ss:$12 sps:$4 sm:$0xff]  }
 0x162   :  { %v523_v16 = vadd.f32 %v2012_v13, %v2552_v34  ;;  %v514_v17 = vpop.f32.mrb[17].mxu0 }
 0x163   :  { %v703_v19 = vadd.f32 %v702_v11, %v2644_v62  ;;  %v800_v20 = vadd.f32 %v799_v10, %v753_v12  ;;  %v515_v21 = vadd.f32 %v2552_v34, %v514_v17  ;;  %v2013_v22 = vpop.f32.mrb[18].mxu0 }
 0x164   :  { %v526_v24 = vadd.f32 %v2013_v22, %v2552_v34  ;;  %v517_v25 = vpop.f32.mrb[19].mxu0  ;;  %v659_v33 = vmax.f32 %v523_v16, 0.0 }
 0x165   :  { %v801_v27 = vadd.f32 %v800_v20, %v754_v18  ;;  %v657_v28 = vmax.f32 %v515_v21, 0.0  ;;  %v704_v31 = vadd.f32 %v703_v19, %v2646_v63  ;;  %v518_v32 = vadd.f32 %v2552_v34, %v517_v25 }
 0x166   :  { %v660_v37 = vmax.f32 %v526_v24, 0.0  ;;  %v758_v57 = vmul.f32 %v659_v33, %v659_v33 }
 0x167   :  { %v705_v38 = vadd.f32 %v704_v31, %v657_v28  ;;  %v756_v39 = vmul.f32 %v657_v28, %v657_v28  ;;  %v802_v40 = vadd.f32 %v801_v27, %v755_v23  ;;  %v658_v43 = vmax.f32 %v518_v32, 0.0 }
 0x168   :  { %v894_v48 = vpack.c.bf16 %v660_v37, %v659_v33  ;;  %v759_v2 = vmul.f32 %v660_v37, %v660_v37 }
 0x169   :  { %v803_v49 = vadd.f32 %v802_v40, %v756_v39  ;;  %v706_v50 = vadd.f32 %v705_v38, %v658_v43  ;;  %v757_v51 = vmul.f32 %v658_v43, %v658_v43  ;;  %v2016_v53 = vpop.f32.mrb[20].mxu0  ;;  %v893_v54 = vpack.c.bf16 %v658_v43, %v657_v28 }
 0x16a   :  { %v539_v55 = vadd.f32 %v2016_v53, %v2552_v34  ;;  %v530_v56 = vpop.f32.mrb[21].mxu0 }
 0x16b   :  { %v707_v58 = vadd.f32 %v706_v50, %v659_v33  ;;  %v804_v60 = vadd.f32 %v803_v49, %v757_v51  ;;  %v531_v61 = vadd.f32 %v2552_v34, %v530_v56  ;;  %v2017_v1 = vpop.f32.mrb[22].mxu0  ;;  %1849 = vmatprep.subr.bf16.mxu1 %v893_v54 }
 0x16c   :  { %v542_v5 = vadd.f32 %v2017_v1, %v2552_v34  ;;  %v533_v10 = vpop.f32.mrb[23].mxu0  ;;  %1850 = vmatpush3.bf16.msra.mxu1 %v885_v52  ;;  %v663_v17 = vmax.f32 %v539_v55, 0.0 }
 0x16d   :  { %v805_v11 = vadd.f32 %v804_v60, %v758_v57  ;;  %v661_v12 = vmax.f32 %v531_v61, 0.0  ;;  %v708_v13 = vadd.f32 %v707_v58, %v660_v37  ;;  %v534_v16 = vadd.f32 %v2552_v34, %v533_v10  ;;  %1851 = vmatprep.subr.bf16.mxu1 %v894_v48 }
 0x16e   :  { %v664_v18 = vmax.f32 %v542_v5, 0.0  ;;  %v762_v31 = vmul.f32 %v663_v17, %v663_v17 }
 0x16f   :  { %v709_v19 = vadd.f32 %v708_v13, %v661_v12  ;;  %v760_v20 = vmul.f32 %v661_v12, %v661_v12  ;;  %v806_v21 = vadd.f32 %v805_v11, %v759_v2  ;;  %v662_v22 = vmax.f32 %v534_v16, 0.0 }
 0x170   :  { %1852 = vmatpush3.bf16.msra.mxu1 %v886_v47  ;;  %v896_v23 = vpack.c.bf16 %v664_v18, %v663_v17  ;;  %v763_v39 = vmul.f32 %v664_v18, %v664_v18 }
 0x171   :  { %v807_v24 = vadd.f32 %v806_v21, %v760_v20  ;;  %v710_v42 = vadd.f32 %v709_v19, %v662_v22  ;;  %v761_v46 = vmul.f32 %v662_v22, %v662_v22  ;;  %v2020_v52 = vpop.f32.mrb[24].mxu0  ;;  %v895_v25 = vpack.c.bf16 %v662_v22, %v661_v12 }
 0x172   :  { %v555_v27 = vadd.f32 %v2020_v52, %v2552_v34  ;;  %v546_v28 = vpop.f32.mrb[25].mxu0 }
 0x173   :  { %v711_v32 = vadd.f32 %v710_v42, %v663_v17  ;;  %v808_v33 = vadd.f32 %v807_v24, %v761_v46  ;;  %v547_v37 = vadd.f32 %v2552_v34, %v546_v28  ;;  %v2021_v38 = vpop.f32.mrb[26].mxu0  ;;  %1853 = vmatprep.subr.bf16.mxu1 %v895_v25 }
 0x174   :  { %v558_v44 = vadd.f32 %v2021_v38, %v2552_v34  ;;  %v549_v45 = vpop.f32.mrb[27].mxu0  ;;  %1854 = vmatpush3.bf16.msra.mxu1 %v887_v14  ;;  %v667_v49 = vmax.f32 %v555_v27, 0.0 }
 0x175   :  { %v809_v47 = vadd.f32 %v808_v33, %v762_v31  ;;  %v665_v40 = vmax.f32 %v547_v37, 0.0  ;;  %v712_v43 = vadd.f32 %v711_v32, %v664_v18  ;;  %v550_v48 = vadd.f32 %v2552_v34, %v549_v45  ;;  %1855 = vmatprep.subr.bf16.mxu1 %v896_v23 }
 0x176   :  { %v668_v50 = vmax.f32 %v558_v44, 0.0  ;;  %v766_v1 = vmul.f32 %v667_v49, %v667_v49 }
 0x177   :  { %v713_v51 = vadd.f32 %v712_v43, %v665_v40  ;;  %v764_v53 = vmul.f32 %v665_v40, %v665_v40  ;;  %v810_v54 = vadd.f32 %v809_v47, %v763_v39  ;;  %v666_v55 = vmax.f32 %v550_v48, 0.0 }
 0x178   :  { %1856 = vmatpush3.bf16.msra.mxu1 %v888_v9  ;;  %v898_v56 = vpack.c.bf16 %v668_v50, %v667_v49  ;;  %v767_v12 = vmul.f32 %v668_v50, %v668_v50 }
 0x179   :  { %v811_v57 = vadd.f32 %v810_v54, %v764_v53  ;;  %v714_v0 = vadd.f32 %v713_v51, %v666_v55  ;;  %v765_v8 = vmul.f32 %v666_v55, %v666_v55  ;;  %v2024_v14 = vpop.f32.mrb[28].mxu0  ;;  %v897_v58 = vpack.c.bf16 %v666_v55, %v665_v40 }
 0x17a   :  { %v571_v60 = vadd.f32 %v2024_v14, %v2552_v34  ;;  %v562_v61 = vpop.f32.mrb[29].mxu0 }
 0x17b   :  { %v715_v2 = vadd.f32 %v714_v0, %v667_v49  ;;  %v812_v5 = vadd.f32 %v811_v57, %v765_v8  ;;  %v563_v10 = vadd.f32 %v2552_v34, %v562_v61  ;;  %v2025_v11 = vpop.f32.mrb[30].mxu0  ;;  %1857 = vmatprep.subr.bf16.mxu1 %v897_v58 }
 0x17c   :  { %v574_v3 = vadd.f32 %v2025_v11, %v2552_v34  ;;  %v565_v4 = vpop.f32.mrb[31].mxu0  ;;  %1858 = vmatpush3.bf16.msra.mxu1 %v889_v41  ;;  %v671_v18 = vmax.f32 %v571_v60, 0.0 }
 0x17d   :  { %v813_v9 = vadd.f32 %v812_v5, %v766_v1  ;;  %v669_v13 = vmax.f32 %v563_v10, 0.0  ;;  %v716_v16 = vadd.f32 %v715_v2, %v668_v50  ;;  %v566_v17 = vadd.f32 %v2552_v34, %v565_v4  ;;  %1859 = vmatprep.subr.bf16.mxu1 %v898_v56  ;;  %v2268_v50 = vld [vmem:[#allocation10] ss:$12 sps:$4 sm:$0xff]  }
 0x17e   :  { %v672_v19 = vmax.f32 %v574_v3, 0.0  ;;  %v770_v27 = vmul.f32 %v671_v18, %v671_v18 }
 0x17f   :  { %v717_v20 = vadd.f32 %v716_v16, %v669_v13  ;;  %v768_v21 = vmul.f32 %v669_v13, %v669_v13  ;;  %v814_v22 = vadd.f32 %v813_v9, %v767_v12  ;;  %v670_v23 = vmax.f32 %v566_v17, 0.0 }
 0x180   :  { %1860 = vmatpush3.bf16.msra.mxu1 %v890_v36  ;;  %v900_v24 = vpack.c.bf16 %v672_v19, %v671_v18  ;;  %v771_v37 = vmul.f32 %v672_v19, %v672_v19 }
 0x181   :  { %v815_v42 = vadd.f32 %v814_v22, %v768_v21  ;;  %v718_v26 = vadd.f32 %v717_v20, %v670_v23  ;;  %v769_v35 = vmul.f32 %v670_v23, %v670_v23  ;;  %v2028_v41 = vpop.f32.mrb[32].mxu0  ;;  %v899_v46 = vpack.c.bf16 %v670_v23, %v669_v13  ;;  %v2273_v13 = vld [vmem:[#allocation10 + $0x18] ss:$12 sps:$4 sm:$0xff]  }
 0x182   :  { %v587_v52 = vadd.f32 %v2028_v41, %v2552_v34  ;;  %v578_v25 = vpop.f32.mrb[33].mxu0 }
 0x183   :  { %v719_v28 = vadd.f32 %v718_v26, %v671_v18  ;;  %v816_v31 = vadd.f32 %v815_v42, %v769_v35  ;;  %v579_v32 = vadd.f32 %v2552_v34, %v578_v25  ;;  %v2029_v33 = vpop.f32.mrb[34].mxu0  ;;  %1861 = vmatprep.subr.bf16.mxu1 %v899_v46  ;;  %v2274_v18 = vld [vmem:[#allocation10 + $0x34] ss:$12 sps:$4 sm:$0xff]  }
 0x184   :  { %v675_v38 = vmax.f32 %v587_v52, 0.0  ;;  %v590_v29 = vadd.f32 %v2029_v33, %v2552_v34  ;;  %v581_v30 = vpop.f32.mrb[35].mxu0  ;;  %1862 = vmatpush3.bf16.msra.mxu1 %v891_v15 }
 0x185   :  { %v817_v36 = vadd.f32 %v816_v31, %v770_v27  ;;  %v673_v39 = vmax.f32 %v579_v32, 0.0  ;;  %v720_v44 = vadd.f32 %v719_v28, %v672_v19  ;;  %v582_v45 = vadd.f32 %v2552_v34, %v581_v30  ;;  %1863 = vmatprep.subr.bf16.mxu1 %v900_v24 }
 0x186   :  { %v676_v47 = vmax.f32 %v590_v29, 0.0  ;;  %v774_v51 = vmul.f32 %v675_v38, %v675_v38 }
 0x187   :  { %v721_v40 = vadd.f32 %v720_v44, %v673_v39  ;;  %v772_v43 = vmul.f32 %v673_v39, %v673_v39  ;;  %v818_v48 = vadd.f32 %v817_v36, %v771_v37  ;;  %v674_v49 = vmax.f32 %v582_v45, 0.0  ;;  %v2276_v44 = vld [vmem:[#allocation10 + $0x30] ss:$12 sps:$4 sm:$0xff]  }
 0x188   :  { %1864 = vmatpush3.bf16.msra.mxu1 %v892_v7  ;;  %v902_v53 = vpack.c.bf16 %v676_v47, %v675_v38  ;;  %v775_v57 = vmul.f32 %v676_v47, %v676_v47 }
 0x189   :  { %v819_v6 = vadd.f32 %v818_v48, %v772_v43  ;;  %v722_v15 = vadd.f32 %v721_v40, %v674_v49  ;;  %v773_v54 = vmul.f32 %v674_v49, %v674_v49  ;;  %v2032_v55 = vpop.f32.mrb[36].mxu0  ;;  %v901_v56 = vpack.c.bf16 %v674_v49, %v673_v39 }
 0x18a   :  { %v603_v0 = vadd.f32 %v2032_v55, %v2552_v34  ;;  %v594_v8 = vpop.f32.mrb[37].mxu0 }
 0x18b   :  { %v723_v14 = vadd.f32 %v722_v15, %v675_v38  ;;  %v820_v58 = vadd.f32 %v819_v6, %v773_v54  ;;  %v595_v60 = vadd.f32 %v2552_v34, %v594_v8  ;;  %v2033_v61 = vpop.f32.mrb[38].mxu0  ;;  %1070 = vmatmul.mubr.bf16.vlgmr.msra.gmra.mrb[0].mxu1 %v2268_v50  ;;  %2042 = vmatprep.subr.bf16.mxu1 %v901_v56 }
 0x18c   :  { %v679_v62 = vmax.f32 %v603_v0, 0.0  ;;  %v606_v63 = vadd.f32 %v2033_v61, %v2552_v34  ;;  %v597_v7 = vpop.f32.mrb[39].mxu0  ;;  %2043 = vmatpush3.bf16.msra.mxu1 %v901_v56  ;;  %1077 = vmatprep.mubr.bf16.mxu1 %v2271_v59 }
 0x18d   :  { %v821_v1 = vadd.f32 %v820_v58, %v774_v51  ;;  %v677_v2 = vmax.f32 %v595_v60, 0.0  ;;  %v724_v5 = vadd.f32 %v723_v14, %v676_v47  ;;  %v598_v10 = vadd.f32 %v2552_v34, %v597_v7  ;;  %2044 = vmatprep.subr.bf16.mxu1 %v902_v53  ;;  %v2277_v47 = vld [vmem:[#allocation10 + $0x4c] ss:$12 sps:$4 sm:$0xff]  }
 0x18e   :  { %v680_v11 = vmax.f32 %v606_v63, 0.0  ;;  %v778_v16 = vmul.f32 %v679_v62, %v679_v62 }
 0x18f   :  { %v725_v12 = vadd.f32 %v724_v5, %v677_v2  ;;  %v776_v3 = vmul.f32 %v677_v2, %v677_v2  ;;  %v822_v4 = vadd.f32 %v821_v1, %v775_v57  ;;  %v678_v9 = vmax.f32 %v598_v10, 0.0  ;;  %v2279_v5 = vld [vmem:[#allocation10 + $0x48] ss:$12 sps:$4 sm:$0xff]  }
 0x190   :  { %2045 = vmatpush3.bf16.msra.mxu1 %v902_v53  ;;  %v904_v17 = vpack.c.bf16 %v680_v11, %v679_v62  ;;  %v779_v24 = vmul.f32 %v680_v11, %v680_v11 }
 0x191   :  { %v823_v19 = vadd.f32 %v822_v4, %v776_v3  ;;  %v726_v20 = vadd.f32 %v725_v12, %v678_v9  ;;  %v777_v21 = vmul.f32 %v678_v9, %v678_v9  ;;  %v2036_v22 = vpop.f32.mrb[40].mxu0  ;;  %v903_v23 = vpack.c.bf16 %v678_v9, %v677_v2 }
 0x192   :  { %v619_v42 = vadd.f32 %v2036_v22, %v2552_v34  ;;  %v610_v26 = vpop.f32.mrb[41].mxu0  ;;  %v2283_v22 = vld [vmem:[#allocation10 + $0x7c] ss:$12 sps:$4 sm:$0xff]  }
 0x193   :  { %v727_v35 = vadd.f32 %v726_v20, %v679_v62  ;;  %v824_v41 = vadd.f32 %v823_v19, %v777_v21  ;;  %v611_v46 = vadd.f32 %v2552_v34, %v610_v26  ;;  %v2037_v52 = vpop.f32.mrb[42].mxu0  ;;  %1078 = vmatmul.mubr.bf16.gmra.mrb[4].mxu1 %v2273_v13  ;;  %2046 = vmatprep.subr.bf16.mxu1 %v903_v23  ;;  %v2282_v21 = vld [vmem:[#allocation10 + $0x60] ss:$12 sps:$4 sm:$0xff]  }
 0x194   :  { %v683_v25 = vmax.f32 %v619_v42, 0.0  ;;  %v622_v27 = vadd.f32 %v2037_v52, %v2552_v34  ;;  %v613_v28 = vpop.f32.mrb[43].mxu0  ;;  %2047 = vmatpush3.bf16.msra.mxu1 %v903_v23  ;;  %1085 = vmatprep.mubr.bf16.mxu1 %v2274_v18  ;;  %v2285_v23 = vld [vmem:[#allocation10 + $0x78] ss:$12 sps:$4 sm:$0xff]   ;;  %v2288_v42 = vld [vmem:[#allocation10 + $0x90] ss:$12 sps:$4 sm:$0xff]  }
 0x195   :  { %v825_v31 = vadd.f32 %v824_v41, %v778_v16  ;;  %v681_v32 = vmax.f32 %v611_v46, 0.0  ;;  %v728_v33 = vadd.f32 %v727_v35, %v680_v11  ;;  %v614_v37 = vadd.f32 %v2552_v34, %v613_v28  ;;  %2048 = vmatprep.subr.bf16.mxu1 %v904_v17  ;;  %v2280_v11 = vld [vmem:[#allocation10 + $0x64] ss:$12 sps:$4 sm:$0xff]   ;;  %v2289_v26 = vld [vmem:[#allocation10 + $0xac] ss:$12 sps:$4 sm:$0xff]  }
 0x196   :  { %v684_v38 = vmax.f32 %v622_v27, 0.0  ;;  %v782_v45 = vmul.f32 %v683_v25, %v683_v25  ;;  %v2291_v35 = vld [vmem:[#allocation10 + $0xa8] ss:$12 sps:$4 sm:$0xff]   ;;  %v2293_v46 = vld [vmem:[#allocation10 + $0x20] ss:$12 sps:$4 sm:$0xff]  }
 0x197   :  { %v729_v29 = vadd.f32 %v728_v33, %v681_v32  ;;  %v780_v30 = vmul.f32 %v681_v32, %v681_v32  ;;  %v826_v36 = vadd.f32 %v825_v31, %v779_v24  ;;  %v682_v39 = vmax.f32 %v614_v37, 0.0  ;;  %v2286_v24 = vld [vmem:[#allocation10 + $0x94] ss:$12 sps:$4 sm:$0xff]   ;;  %v2294_v52 = vld [vmem:[#allocation10 + $0x38] ss:$12 sps:$4 sm:$0xff]  }
 0x198   :  { %2049 = vmatpush3.bf16.msra.mxu1 %v904_v17  ;;  %v906_v40 = vpack.c.bf16 %v684_v38, %v683_v25  ;;  %v783_v53 = vmul.f32 %v684_v38, %v684_v38  ;;  %v2292_v41 = vld [vmem:[#allocation10 + $0x8] ss:$12 sps:$4 sm:$0xff]   ;;  %v2297_v28 = vld [vmem:[#allocation10 + $0x80] ss:$12 sps:$4 sm:$0xff]   ;;  %v2298_v31 = vld [vmem:[#allocation10 + $0x98] ss:$12 sps:$4 sm:$0xff]  }
 0x199   :  { %v827_v43 = vadd.f32 %v826_v36, %v780_v30  ;;  %v730_v48 = vadd.f32 %v729_v29, %v682_v39  ;;  %v781_v49 = vmul.f32 %v682_v39, %v682_v39  ;;  %v2040_v50 = vpop.f32.mrb[44].mxu0  ;;  %v905_v51 = vpack.c.bf16 %v682_v39, %v681_v32  ;;  %v2296_v27 = vld [vmem:[#allocation10 + $0x68] ss:$12 sps:$4 sm:$0xff]   ;;  %v2299_v32 = vld [vmem:[#allocation10 + $0xb0] ss:$12 sps:$4 sm:$0xff]  }
 0x19a   :  { %v635_v59 = vadd.f32 %v2040_v50, %v2552_v34  ;;  %v626_v6 = vpop.f32.mrb[45].mxu0 }
 0x19b   :  { %v731_v15 = vadd.f32 %v730_v48, %v683_v25  ;;  %v828_v54 = vadd.f32 %v827_v43, %v781_v49  ;;  %v627_v55 = vadd.f32 %v2552_v34, %v626_v6  ;;  %v2041_v56 = vpop.f32.mrb[46].mxu0  ;;  %1086 = vmatmul.mubr.bf16.gmra.mrb[8].mxu1 %v2276_v44  ;;  %2050 = vmatprep.subr.bf16.mxu1 %v905_v51  ;;  %v2295_v25 = vld [vmem:[#allocation10 + $0x50] ss:$12 sps:$4 sm:$0xff]  }
 0x19c   :  { %v687_v57 = vmax.f32 %v635_v59, 0.0  ;;  %v638_v0 = vadd.f32 %v2041_v56, %v2552_v34  ;;  %v629_v8 = vpop.f32.mrb[47].mxu0  ;;  %1093 = vmatprep.mubr.bf16.mxu1 %v2277_v47  ;;  %2051 = vmatpush3.bf16.msra.mxu1 %v905_v51 }
 0x19d   :  { %v829_v14 = vadd.f32 %v828_v54, %v782_v45  ;;  %v685_v58 = vmax.f32 %v627_v55, 0.0  ;;  %v732_v60 = vadd.f32 %v731_v15, %v684_v38  ;;  %v630_v61 = vadd.f32 %v2552_v34, %v629_v8  ;;  %2052 = vmatprep.subr.bf16.mxu1 %v906_v40 }
 0x19e   :  { %v688_v62 = vmax.f32 %v638_v0, 0.0  ;;  %v786_v10 = vmul.f32 %v687_v57, %v687_v57 }
 0x19f   :  { %v733_v63 = vadd.f32 %v732_v60, %v685_v58  ;;  %v784_v7 = vmul.f32 %v685_v58, %v685_v58  ;;  %v830_v1 = vadd.f32 %v829_v14, %v783_v53  ;;  %v686_v2 = vmax.f32 %v630_v61, 0.0 }
 0x1a0   :  { %2053 = vmatpush3.bf16.msra.mxu1 %v906_v40  ;;  %v908_v12 = vpack.c.bf16 %v688_v62, %v687_v57  ;;  %v787_v16 = vmul.f32 %v688_v62, %v688_v62 }
 0x1a1   :  { %v831_v3 = vadd.f32 %v830_v1, %v784_v7  ;;  %v734_v4 = vadd.f32 %v733_v63, %v686_v2  ;;  %v785_v9 = vmul.f32 %v686_v2, %v686_v2  ;;  %v907_v13 = vpack.c.bf16 %v686_v2, %v685_v58 }
 0x1a3   :  { %v735_v17 = vadd.f32 %v734_v4, %v687_v57  ;;  %v832_v18 = vadd.f32 %v831_v3, %v785_v9  ;;  %1094 = vmatmul.mubr.bf16.gmra.mrb[12].mxu1 %v2279_v5  ;;  %2054 = vmatprep.subr.bf16.mxu1 %v907_v13 }
 0x1a4   :  { %1101 = vmatprep.mubr.bf16.mxu1 %v2280_v11  ;;  %2055 = vmatpush3.bf16.msra.mxu1 %v907_v13 }
 0x1a5   :  { %v2722_v34 = vadd.f32 %v735_v17, %v688_v62  ;;  %v833_v19 = vadd.f32 %v832_v18, %v786_v10  ;;  %2056 = vmatprep.subr.bf16.mxu1 %v908_v12 }
 0x1a7   :  { %v2724_v20 = vadd.f32 %v833_v19, %v787_v16 }
 0x1a8   :  { %2057 = vmatpush3.bf16.msra.mxu1 %v908_v12 }
 0x1ab   :  { %1102 = vmatmul.mubr.bf16.gmra.mrb[16].mxu1 %v2282_v21 }
 0x1ac   :  { %1109 = vmatprep.mubr.bf16.mxu1 %v2283_v22 }
 0x1b3   :  { %1110 = vmatmul.mubr.bf16.gmra.mrb[20].mxu1 %v2285_v23 }
 0x1b4   :  { %1117 = vmatprep.mubr.bf16.mxu1 %v2286_v24 }
 0x1bb   :  { %1118 = vmatmul.mubr.bf16.gmra.mrb[24].mxu1 %v2288_v42 }
 0x1bc   :  { %1125 = vmatprep.mubr.bf16.mxu1 %v2289_v26 }
 0x1c3   :  { %1126 = vmatmul.mubr.bf16.gmra.mrb[28].mxu1 %v2291_v35 }
 0x1c4   :  { %2058 = vmatprep.mubr.bf16.mxu1 %v2292_v41 }
 0x1cb   :  { %2059 = vmatmul.mubr.bf16.vlgmr.msra.gmra.mrb[32].mxu1 %v2293_v46 }
 0x1cc   :  { %2062 = vmatprep.mubr.bf16.mxu1 %v2294_v52 }
 0x1d3   :  { %2063 = vmatmul.mubr.bf16.gmra.mrb[36].mxu1 %v2295_v25 }
 0x1d4   :  { %2066 = vmatprep.mubr.bf16.mxu1 %v2296_v27 }
 0x1db   :  { %2067 = vmatmul.mubr.bf16.gmra.mrb[40].mxu1 %v2297_v28 }
 0x1dc   :  { %2070 = vmatprep.mubr.bf16.mxu1 %v2298_v31 }
 0x1e3   :  { %2071 = vmatmul.mubr.bf16.gmra.mrb[44].mxu1 %v2299_v32 }
 0x25e   :  { %v1865_v33 = vpop.f32.mrb[0].mxu1 }
 0x25f   :  { %v1866_v37 = vpop.f32.mrb[1].mxu1 }
 0x260   :  { %v1867_v38 = vadd.f32 %v1866_v37, %v1865_v33  ;;  %v1868_v29 = vpop.f32.mrb[2].mxu1 }
 0x261   :  { %v1869_v30 = vpop.f32.mrb[3].mxu1 }
 0x262   :  { %v1870_v36 = vadd.f32 %v1869_v30, %v1868_v29 }
 0x266   :  { %v1871_v39 = vpop.f32.mrb[4].mxu1 }
 0x267   :  { %v1872_v44 = vpop.f32.mrb[5].mxu1 }
 0x268   :  { %v1873_v45 = vadd.f32 %v1872_v44, %v1871_v39  ;;  %v1874_v47 = vpop.f32.mrb[6].mxu1 }
 0x269   :  { %v1875_v40 = vpop.f32.mrb[7].mxu1 }
 0x26a   :  { %v1876_v43 = vadd.f32 %v1875_v40, %v1874_v47 }
 0x26e   :  { %v1877_v48 = vpop.f32.mrb[8].mxu1 }
 0x26f   :  { %v1878_v49 = vpop.f32.mrb[9].mxu1 }
 0x270   :  { %v1879_v50 = vadd.f32 %v1878_v49, %v1877_v48  ;;  %v1880_v51 = vpop.f32.mrb[10].mxu1 }
 0x271   :  { %v1881_v53 = vpop.f32.mrb[11].mxu1 }
 0x272   :  { %v1882_v59 = vadd.f32 %v1881_v53, %v1880_v51 }
 0x276   :  { %v1883_v6 = vpop.f32.mrb[12].mxu1 }
 0x277   :  { %v1884_v15 = vpop.f32.mrb[13].mxu1 }
 0x278   :  { %v1885_v54 = vadd.f32 %v1884_v15, %v1883_v6  ;;  %v1886_v55 = vpop.f32.mrb[14].mxu1 }
 0x279   :  { %v1887_v56 = vpop.f32.mrb[15].mxu1 }
 0x27a   :  { %v1888_v57 = vadd.f32 %v1887_v56, %v1886_v55 }
 0x27e   :  { %v1889_v0 = vpop.f32.mrb[16].mxu1 }
 0x27f   :  { %v1890_v8 = vpop.f32.mrb[17].mxu1 }
 0x280   :  { %v1891_v14 = vadd.f32 %v1890_v8, %v1889_v0  ;;  %v1892_v58 = vpop.f32.mrb[18].mxu1 }
 0x281   :  { %v1893_v60 = vpop.f32.mrb[19].mxu1 }
 0x282   :  { %v1894_v61 = vadd.f32 %v1893_v60, %v1892_v58 }
 0x286   :  { %v1895_v62 = vpop.f32.mrb[20].mxu1 }
 0x287   :  { %v1896_v63 = vpop.f32.mrb[21].mxu1 }
 0x288   :  { %v1897_v7 = vadd.f32 %v1896_v63, %v1895_v62  ;;  %v1898_v1 = vpop.f32.mrb[22].mxu1 }
 0x289   :  { %v1899_v2 = vpop.f32.mrb[23].mxu1 }
 0x28a   :  { %v1900_v5 = vadd.f32 %v1899_v2, %v1898_v1 }
 0x28e   :  { %v1901_v10 = vpop.f32.mrb[24].mxu1 }
 0x28f   :  { %v1902_v11 = vpop.f32.mrb[25].mxu1 }
 0x290   :  { %v1903_v12 = vadd.f32 %v1902_v11, %v1901_v10  ;;  %v1904_v3 = vpop.f32.mrb[26].mxu1 }
 0x291   :  { %v1905_v4 = vpop.f32.mrb[27].mxu1 }
 0x292   :  { %v1906_v9 = vadd.f32 %v1905_v4, %v1904_v3 }
 0x296   :  { %v1907_v13 = vpop.f32.mrb[28].mxu1 }
 0x297   :  { %v1908_v16 = vpop.f32.mrb[29].mxu1 }
 0x298   :  { %v1909_v17 = vadd.f32 %v1908_v16, %v1907_v13  ;;  %v1910_v18 = vpop.f32.mrb[30].mxu1 }
 0x299   :  { %v1911_v19 = vpop.f32.mrb[31].mxu1 }
 0x29a   :  { %v1912_v21 = vadd.f32 %v1911_v19, %v1910_v18 }
 0x29e   :  { %v2060_v22 = vpop.f32.mrb[32].mxu1 }
 0x29f   :  { %v2726_v23 = vadd.f32 %v2060_v22, %v1873_v45  ;;  %v1168_v24 = vpop.f32.mrb[33].mxu1 }
 0x2a0   :  { %v2728_v42 = vadd.f32 %v1867_v38, %v1168_v24  ;;  %v2061_v26 = vpop.f32.mrb[34].mxu1 }
 0x2a1   :  { %v2730_v35 = vadd.f32 %v2061_v26, %v1876_v43  ;;  %v1171_v41 = vpop.f32.mrb[35].mxu1 }
 0x2a2   :  { %v2732_v46 = vadd.f32 %v1870_v36, %v1171_v41 }
 0x2a6   :  { %v2064_v52 = vpop.f32.mrb[36].mxu1 }
 0x2a7   :  { %v2734_v25 = vadd.f32 %v2064_v52, %v1885_v54  ;;  %v1184_v27 = vpop.f32.mrb[37].mxu1 }
 0x2a8   :  { %v2736_v28 = vadd.f32 %v1879_v50, %v1184_v27  ;;  %v2065_v31 = vpop.f32.mrb[38].mxu1 }
 0x2a9   :  { %v2738_v32 = vadd.f32 %v2065_v31, %v1888_v57  ;;  %v1187_v33 = vpop.f32.mrb[39].mxu1 }
 0x2aa   :  { %v2740_v37 = vadd.f32 %v1882_v59, %v1187_v33 }
 0x2ae   :  { %v2068_v38 = vpop.f32.mrb[40].mxu1 }
 0x2af   :  { %v2742_v29 = vadd.f32 %v2068_v38, %v1897_v7  ;;  %v1200_v30 = vpop.f32.mrb[41].mxu1 }
 0x2b0   :  { %v2744_v39 = vadd.f32 %v1891_v14, %v1200_v30  ;;  %v2069_v36 = vpop.f32.mrb[42].mxu1 }
 0x2b1   :  { %v2746_v44 = vadd.f32 %v2069_v36, %v1900_v5  ;;  %v1203_v45 = vpop.f32.mrb[43].mxu1 }
 0x2b2   :  { %v2748_v47 = vadd.f32 %v1894_v61, %v1203_v45 }
 0x2b6   :  { %v2072_v40 = vpop.f32.mrb[44].mxu1 }
 0x2b7   :  { %v2750_v43 = vadd.f32 %v2072_v40, %v1909_v17  ;;  %v1216_v48 = vpop.f32.mrb[45].mxu1 }
 0x2b8   :  { %v2752_v49 = vadd.f32 %v1903_v12, %v1216_v48  ;;  %v2073_v50 = vpop.f32.mrb[46].mxu1 }
 0x2b9   :  { %v2754_v51 = vadd.f32 %v2073_v50, %v1912_v21  ;;  %v1219_v53 = vpop.f32.mrb[47].mxu1 }
 0x2ba   :  { %v2756_v59 = vadd.f32 %v1906_v9, %v1219_v53 }
 0x2bb   :  { %2422 = dma.done.wait [#allocation6], 64 }
 0x2bc   :  { %2423 = vsyncadd [#allocation6], 4294967232  ;;  %v2436_v6 = vmov 127   ;;  %v1458_v15 = vld [vmem:[#allocation13] sm:$0xff]  ;;  %v1459_v54 = vld [vmem:[#allocation13 + $0x8] sm:$0xff]  ;;  %v1273_v16 = vrot.slane %v2722_v34, 4 }
 0x2bd   :  { %2301 = vset.pattern.permute.xlu1 %v2436_v6  ;;  %2300 = vset.pattern.permute.xlu0 %v2436_v6  ;;  %v1460_v55 = vld [vmem:[#allocation13 + $0x10] sm:$0xff]  ;;  %v2165_v56 = vpack.c.bf16 %v1459_v54, %v1458_v15  ;;  %v1461_v57 = vld [vmem:[#allocation13 + $0x18] sm:$0xff]  ;;  %v1462_v8 = vld [vmem:[#allocation13 + $0x20] sm:$0xff]  ;;  %v1282_v18 = vrot.slane %v2724_v20, 4  ;;  %vm2438_vm0 = vmmov 0  }
 0x2be   :  { %1352 = vperm.xlu1 %2301, %v2726_v23   ;;  %1342 = vperm.xlu0 %2300, %v2728_v42   ;;  %v2169_v0 = vpack.c.bf16 %v1461_v57, %v1460_v55  ;;  %v1463_v14 = vld [vmem:[#allocation13 + $0x28] sm:$0xff]  ;;  %v1464_v60 = vld [vmem:[#allocation13 + $0x30] sm:$0xff]  ;;  %v1465_v61 = vld [vmem:[#allocation13 + $0x38] sm:$0xff]  ;;  %v1274_v17 = vadd.f32 %v1273_v16, %v2722_v34  ;;  %v1316_v55 = vlaneseq }
 0x2bf   :  { %2166 = vmatprep.subr.bf16.mxu0 %v2165_v56  ;;  %v2173_v58 = vpack.c.bf16 %v1463_v14, %v1462_v8  ;;  %v2177_v62 = vpack.c.bf16 %v1465_v61, %v1464_v60  ;;  %v1466_v63 = vld [vmem:[#allocation13 + $0x40] sm:$0xff]  ;;  %v1467_v7 = vld [vmem:[#allocation13 + $0x48] sm:$0xff]  ;;  %v1468_v2 = vld [vmem:[#allocation13 + $0x50] sm:$0xff]  ;;  %v1283_v21 = vadd.f32 %v1282_v18, %v2724_v20 }
 0x2c0   :  { %2168 = vmatpush3.bf16.msra.mxu0 %v2165_v56  ;;  %v2181_v1 = vpack.c.bf16 %v1467_v7, %v1466_v63  ;;  %v1469_v5 = vld [vmem:[#allocation13 + $0x58] sm:$0xff]  ;;  %v1470_v11 = vld [vmem:[#allocation13 + $0x60] sm:$0xff]  ;;  %v1471_v12 = vld [vmem:[#allocation13 + $0x68] sm:$0xff]  ;;  %v1275_v19 = vrot.slane %v1274_v17, 2  ;;  %v1317_v57 = vshrl.u32 %v1316_v55, 7 }
 0x2c1   :  { %2170 = vmatprep.subr.bf16.mxu0 %v2169_v0  ;;  %v2185_v10 = vpack.c.bf16 %v1469_v5, %v1468_v2  ;;  %v2189_v3 = vpack.c.bf16 %v1471_v12, %v1470_v11  ;;  %v1472_v4 = vld [vmem:[#allocation13 + $0x70] sm:$0xff]  ;;  %v1473_v9 = vld [vmem:[#allocation13 + $0x78] sm:$0xff]  ;;  %v1284_v24 = vrot.slane %v1283_v21, 2 }
 0x2c2   :  { %1357 = vperm.xlu1 %2301, %v2730_v35   ;;  %1347 = vperm.xlu0 %2300, %v2732_v46   ;;  %v2193_v13 = vpack.c.bf16 %v1473_v9, %v1472_v4  ;;  %v1276_v22 = vadd.f32 %v1275_v19, %v1274_v17  ;;  %v1270_v26 = vld [vmem:[%s2930_s4] sm:$0x1]  ;;  %v1318_v14 = vsub.s32 0, %v1317_v57 }
 0x2c3   :  { %v1271_v41 = vmax.f32 %v1270_v26, 0.0  ;;  %v1285_v27 = vadd.f32 %v1284_v24, %v1283_v21  ;;  %v1295_v54 = vld [vmem:[%s2931_s5] sm:$0x1] }
 0x2c4   :  { %2172 = vmatpush3.bf16.msra.mxu0 %v2169_v0  ;;  %v1277_v52 = vrot.slane %v1276_v22, 1  ;;  %v1337_v8 = vld [vmem:[%s2932_s6] sm:$0x1] }
 0x2c5   :  { %2174 = vmatprep.subr.bf16.mxu0 %v2173_v58  ;;  %v1279_v33 = vmul.f32 84.0, %v1271_v41  ;;  %v1286_v38 = vrot.slane %v1285_v27, 1 }
 0x2c6   :  { %1367 = vperm.xlu1 %2301, %v2740_v37   ;;  %1362 = vperm.xlu0 %2300, %v2736_v28   ;;  %v1278_v31 = vadd.f32 %v1277_v52, %v1276_v22 }
 0x2c7   :  { %v1287_v36 = vadd.f32 %v1286_v38, %v1285_v27  ;;  %v1288_v34 = vmul.f32 %v1279_v33, %v1271_v41 }
 0x2c8   :  { %2176 = vmatpush3.bf16.msra.mxu0 %v2173_v58  ;;  %v1280_v30 = vsub.f32 %v1278_v31, %v1279_v33 }
 0x2c9   :  { %2178 = vmatprep.subr.bf16.mxu0 %v2177_v62  ;;  %v1289_v45 = vsub.f32 %v1287_v36, %v1288_v34 }
 0x2ca   :  { %1377 = vperm.xlu1 %2301, %v2738_v32   ;;  %1372 = vperm.xlu0 %2300, %v2734_v25   ;;  %v1290_v40 = vmul.f32 0.0033333334, %v1280_v30 }
 0x2cb   :  { %v1291_v48 = vmul.f32 0.0033333334, %v1289_v45 }
 0x2cc   :  { %2180 = vmatpush3.bf16.msra.mxu0 %v2177_v62  ;;  %v1292_v50 = vmul.f32 %v1290_v40, %v1290_v40 }
 0x2cd   :  { %2182 = vmatprep.subr.bf16.mxu0 %v2181_v1 }
 0x2ce   :  { %1387 = vperm.xlu1 %2301, %v2748_v47   ;;  %1382 = vperm.xlu0 %2300, %v2744_v39   ;;  %v1293_v20 = vsub.f32 %v1291_v48, %v1292_v50 }
 0x2d0   :  { %2184 = vmatpush3.bf16.msra.mxu0 %v2181_v1  ;;  %v1294_v53 = vmax.f32 %v1293_v20, 0.0 }
 0x2d1   :  { %2186 = vmatprep.subr.bf16.mxu0 %v2185_v10 }
 0x2d2   :  { %1397 = vperm.xlu1 %2301, %v2746_v44   ;;  %1392 = vperm.xlu0 %2300, %v2742_v29   ;;  %v1296_v6 = vadd.f32 1e-05, %v1294_v53 }
 0x2d4   :  { %2188 = vmatpush3.bf16.msra.mxu0 %v2185_v10  ;;  %2302 = vrsqrt.f32 %v1296_v6 }
 0x2d5   :  { %2190 = vmatprep.subr.bf16.mxu0 %v2189_v3 }
 0x2d6   :  { %1407 = vperm.xlu1 %2301, %v2756_v59   ;;  %1402 = vperm.xlu0 %2300, %v2752_v49  }
 0x2d8   :  { %2192 = vmatpush3.bf16.msra.mxu0 %v2189_v3 }
 0x2d9   :  { %2194 = vmatprep.subr.bf16.mxu0 %v2193_v13 }
 0x2da   :  { %1417 = vperm.xlu1 %2301, %v2754_v51   ;;  %1412 = vperm.xlu0 %2300, %v2750_v43  }
 0x2dc   :  { %2196 = vmatpush3.bf16.msra.mxu0 %v2193_v13 }
 0x2de   :  { %v2303_v15 = vpop.eup %2302 }
 0x2df   :  { %v1298_v56 = vmul.f32 %v2303_v15, %v1295_v54 }
 0x2e1   :  { %v1338_v0 = vmul.f32 %v1298_v56, %v1290_v40  ;;  %v2787_v60 = vrot.slane %v1298_v56, %v1318_v14 }
 0x2e3   :  { %v1339_v58 = vsub.f32 %v1337_v8, %v1338_v0  ;;  %v1321_v62 = vmul.f32 %v2787_v60, %v2728_v42  ;;  %v1323_v2 = vmul.f32 %v2787_v60, %v2726_v23  ;;  %v1322_v10 = vmul.f32 %v2787_v60, %v2732_v46 }
 0x2e4   :  { %v1324_v9 = vmul.f32 %v2787_v60, %v2730_v35  ;;  %v1325_v46 = vmul.f32 %v2787_v60, %v2736_v28  ;;  %v1326_v19 = vmul.f32 %v2787_v60, %v2740_v37  ;;  %v1327_v28 = vmul.f32 %v2787_v60, %v2734_v25 }
 0x2e5   :  { %v2789_v61 = vrot.slane %v1339_v58, %v1318_v14  ;;  %v1328_v37 = vmul.f32 %v2787_v60, %v2738_v32  ;;  %v1329_v25 = vmul.f32 %v2787_v60, %v2744_v39  ;;  %v1330_v32 = vmul.f32 %v2787_v60, %v2748_v47 }
 0x2e6   :  { %v1331_v39 = vmul.f32 %v2787_v60, %v2742_v29  ;;  %v1332_v47 = vmul.f32 %v2787_v60, %v2746_v44  ;;  %v1333_v29 = vmul.f32 %v2787_v60, %v2752_v49  ;;  %v1334_v44 = vmul.f32 %v2787_v60, %v2756_v59 }
 0x2e7   :  { %v1335_v49 = vmul.f32 %v2787_v60, %v2750_v43  ;;  %v1336_v59 = vmul.f32 %v2787_v60, %v2754_v51 }
 0x33d   :  { %v2793_v63 = vpop.permute.xlu1 %1352  ;;  %v2795_v7 = vpop.permute.xlu0 %1342 }
 0x33e   :  { %v1426_v1 = vmul.f32 %v2789_v61, %v2795_v7  ;;  %v1428_v5 = vmul.f32 %v2789_v61, %v2793_v63 }
 0x340   :  { %v1442_v11 = vadd.f32 %v1426_v1, %v1321_v62  ;;  %v1444_v4 = vadd.f32 %v1428_v5, %v1323_v2  ;;  %v2437_v5 = vmov 0.0|0.0  }
 0x341   :  { %v2805_v12 = vpop.permute.xlu1 %1357  ;;  %v2807_v42 = vpop.permute.xlu0 %1347  ;;  %2197 = vmatprep.subr.bf16.mxu1 %v2437_v5 }
 0x342   :  { %v1427_v3 = vmul.f32 %v2789_v61, %v2807_v42  ;;  %2106 = vmatprep.mubr.f32.mxu0 %v1442_v11  ;;  %v1429_v23 = vmul.f32 %v2789_v61, %v2805_v12  ;;  %v1815_v11 = vld [vmem:[%s2934_s8] ss:$0 sm:$0xff]  ;;  %s2440_s8 = smov [#allocation15]  }
 0x343   :  { %v1482_v51 = vmul.f32 %v1815_v11, %v2807_v42  ;;  %v1481_v60 = vmul.f32 %v1815_v11, %v2795_v7  ;;  %s1731_s25 = sshll.u32 %s2440_s8, 4  ;;  %s1732_s25 = int_to_ptr.vmem [resolvable:$true] %s1731_s25 }
 0x344   :  { %v1443_v13 = vadd.f32 %v1427_v3, %v1322_v10  ;;  %v1445_v35 = vadd.f32 %v1429_v23, %v1324_v9  ;;  %v2439_v10 = vmov 0.0   ;;  %v1484_v23 = vmul.f32 %v1815_v11, %v2805_v12  ;;  %s2394_s26 = scalar_lea.vmem %s1732_s25, 128  ;;  %p2399_p5 = scmp.lt.s32.totalorder %s1732_s25, %s1732_s25 }
 0x345   :  { %v2817_v16 = vpop.permute.xlu1 %1367  ;;  %v2819_v17 = vpop.permute.xlu0 %1362  ;;  %2162 = vmatprep.mubr.msk.f32.mxu1 %vm2438_vm0, %v2439_v10  ;;  %p2395_p4 = scmp.ne.s32.totalorder %s1732_s25, %s2394_s26  ;;  %p2400_p6 = scmp.lt.s32.totalorder %s2394_s26, %s2394_s26 }
 0x346   :  { %v1430_v18 = vmul.f32 %v2789_v61, %v2819_v17  ;;  %2107 = vmatmul.mubr.f32.vlgmr.msra.gmra.mrb[48].mxu0 %v1443_v13  ;;  %v1431_v21 = vmul.f32 %v2789_v61, %v2817_v16  ;;  %v1483_v13 = vmul.f32 %v1815_v11, %v2793_v63  ;;  %v1485_v7 = vmul.f32 %v1815_v11, %v2819_v17 }
 0x347   :  { %2109 = vmatprep.mubr.f32.mxu0 %v1444_v4  ;;  %p2401_p7 = por %p2400_p6, %p2399_p5 }
 0x348   :  { %v1446_v22 = vadd.f32 %v1430_v18, %v1325_v46  ;;  %v1447_v52 = vadd.f32 %v1431_v21, %v1326_v19 }
 0x349   :  { %v2829_v24 = vpop.permute.xlu1 %1377  ;;  %v2831_v26 = vpop.permute.xlu0 %1372  ;;  %p2402_p8 = pnand %p2401_p7, %p2395_p4 }
 0x34a   :  { %v1432_v41 = vmul.f32 %v2789_v61, %v2831_v26  ;;  %2110 = vmatmul.mubr.f32.gmra.mrb[50].mxu0 %v1445_v35  ;;  %v1433_v27 = vmul.f32 %v2789_v61, %v2829_v24  ;;  %v1488_v63 = vmul.f32 %v1815_v11, %v2829_v24  ;;  %v1487_v12 = vmul.f32 %v1815_v11, %v2831_v26 }
 0x34b   :  { %2112 = vmatprep.mubr.f32.mxu0 %v1446_v22  ;;  %v1486_v22 = vmul.f32 %v1815_v11, %v2817_v16 }
 0x34c   :  { %v1448_v31 = vadd.f32 %v1432_v41, %v1327_v28  ;;  %v1449_v36 = vadd.f32 %v1433_v27, %v1328_v37 }
 0x34d   :  { %v2841_v33 = vpop.permute.xlu1 %1387  ;;  %v2843_v38 = vpop.permute.xlu0 %1382 }
 0x34e   :  { %v1434_v30 = vmul.f32 %v2789_v61, %v2843_v38  ;;  %2113 = vmatmul.mubr.f32.gmra.mrb[52].mxu0 %v1447_v52  ;;  %v1435_v34 = vmul.f32 %v2789_v61, %v2841_v33  ;;  %v1490_v17 = vmul.f32 %v1815_v11, %v2841_v33 }
 0x34f   :  { %2115 = vmatprep.mubr.f32.mxu0 %v1448_v31 }
 0x350   :  { %v1450_v45 = vadd.f32 %v1434_v30, %v1329_v25  ;;  %v1451_v20 = vadd.f32 %v1435_v34, %v1330_v32  ;;  %v1489_v32 = vmul.f32 %v1815_v11, %v2843_v38 }
 0x351   :  { %v2853_v40 = vpop.permute.xlu1 %1397  ;;  %v2855_v48 = vpop.permute.xlu0 %1392 }
 0x352   :  { %v1436_v50 = vmul.f32 %v2789_v61, %v2855_v48  ;;  %2116 = vmatmul.mubr.f32.gmra.mrb[54].mxu0 %v1449_v36  ;;  %v1437_v53 = vmul.f32 %v2789_v61, %v2853_v40  ;;  %v1492_v26 = vmul.f32 %v1815_v11, %v2853_v40 }
 0x353   :  { %2118 = vmatprep.mubr.f32.mxu0 %v1450_v45 }
 0x354   :  { %v1452_v6 = vadd.f32 %v1436_v50, %v1331_v39  ;;  %v1453_v56 = vadd.f32 %v1437_v53, %v1332_v47  ;;  %v1491_v50 = vmul.f32 %v1815_v11, %v2855_v48 }
 0x355   :  { %v2865_v15 = vpop.permute.xlu1 %1407  ;;  %v2867_v54 = vpop.permute.xlu0 %1402 }
 0x356   :  { %v1438_v55 = vmul.f32 %v2789_v61, %v2867_v54  ;;  %2119 = vmatmul.mubr.f32.gmra.mrb[56].mxu0 %v1451_v20  ;;  %v1439_v57 = vmul.f32 %v2789_v61, %v2865_v15  ;;  %v1494_v38 = vmul.f32 %v1815_v11, %v2865_v15 }
 0x357   :  { %2121 = vmatprep.mubr.f32.mxu0 %v1452_v6 }
 0x358   :  { %v1454_v0 = vadd.f32 %v1438_v55, %v1333_v29  ;;  %v1455_v62 = vadd.f32 %v1439_v57, %v1334_v44  ;;  %v1493_v29 = vmul.f32 %v1815_v11, %v2867_v54 }
 0x359   :  { %v2877_v8 = vpop.permute.xlu1 %1417  ;;  %v2879_v14 = vpop.permute.xlu0 %1412 }
 0x35a   :  { %v1440_v58 = vmul.f32 %v2789_v61, %v2879_v14  ;;  %2122 = vmatmul.mubr.f32.gmra.mrb[58].mxu0 %v1453_v56  ;;  %v1441_v1 = vmul.f32 %v2789_v61, %v2877_v8  ;;  %v1496_v48 = vmul.f32 %v1815_v11, %v2877_v8 }
 0x35b   :  { %2124 = vmatprep.mubr.f32.mxu0 %v1454_v0  ;;  %v1495_v0 = vmul.f32 %v1815_v11, %v2879_v14 }
 0x35c   :  { %v1456_v2 = vadd.f32 %v1440_v58, %v1335_v49  ;;  %v1457_v43 = vadd.f32 %v1441_v1, %v1336_v59  ;;  %v1642_v1 = vld [vmem:[#allocation5] sm:$0xf] }
 0x35e   :  { %2125 = vmatmul.mubr.f32.gmra.mrb[60].mxu0 %v1455_v62 }
 0x35f   :  { %2127 = vmatprep.mubr.f32.mxu0 %v1456_v2  ;;  %v1643_v2 = vunpack.c.l.bf16 %v1642_v1 }
 0x362   :  { %2128 = vmatmul.mubr.f32.gmra.mrb[62].mxu0 %v1457_v43 }
 0x419   :  { %v2108_v61 = vpop.f32.mrb[48].mxu0 }
 0x41a   :  { %v1569_v3 = vadd.f32 %v2108_v61, %v1482_v51  ;;  %v1563_v4 = vpop.f32.mrb[49].mxu0 }
 0x41b   :  { %v1564_v9 = vadd.f32 %v1563_v4, %v1481_v60 }
 0x41d   :  { %v2111_v46 = vpop.f32.mrb[50].mxu0  ;;  %v2198_v18 = vpack.c.bf16 %v1569_v3, %v1564_v9 }
 0x41e   :  { %v1579_v19 = vadd.f32 %v2111_v46, %v1484_v23  ;;  %v1573_v35 = vpop.f32.mrb[51].mxu0 }
 0x41f   :  { %v1574_v21 = vadd.f32 %v1573_v35, %v1483_v13  ;;  %2199 = vmatpush3.bf16.msra.mxu1 %v2198_v18 }
 0x420   :  { %2200 = vmatprep.subr.bf16.mxu1 %v2437_v5 }
 0x421   :  { %v2201_v42 = vpack.c.bf16 %v1579_v19, %v1574_v21  ;;  %v2114_v28 = vpop.f32.mrb[52].mxu0 }
 0x422   :  { %v1589_v41 = vadd.f32 %v2114_v28, %v1486_v22  ;;  %v1583_v37 = vpop.f32.mrb[53].mxu0 }
 0x423   :  { %v1584_v52 = vadd.f32 %v1583_v37, %v1485_v7  ;;  %2202 = vmatpush3.bf16.msra.mxu1 %v2201_v42 }
 0x424   :  { %2203 = vmatprep.subr.bf16.mxu1 %v2437_v5 }
 0x425   :  { %v2204_v27 = vpack.c.bf16 %v1589_v41, %v1584_v52  ;;  %v2117_v31 = vpop.f32.mrb[54].mxu0 }
 0x426   :  { %v1599_v25 = vadd.f32 %v2117_v31, %v1488_v63  ;;  %v1593_v16 = vpop.f32.mrb[55].mxu0 }
 0x427   :  { %v1594_v30 = vadd.f32 %v1593_v16, %v1487_v12  ;;  %2205 = vmatpush3.bf16.msra.mxu1 %v2204_v27 }
 0x428   :  { %2206 = vmatprep.subr.bf16.mxu1 %v2437_v5 }
 0x429   :  { %v2207_v36 = vpack.c.bf16 %v1599_v25, %v1594_v30  ;;  %v2120_v34 = vpop.f32.mrb[56].mxu0 }
 0x42a   :  { %v1609_v45 = vadd.f32 %v2120_v34, %v1490_v17  ;;  %v1603_v24 = vpop.f32.mrb[57].mxu0 }
 0x42b   :  { %v1604_v39 = vadd.f32 %v1603_v24, %v1489_v32  ;;  %2208 = vmatpush3.bf16.msra.mxu1 %v2207_v36 }
 0x42c   :  { %2209 = vmatprep.subr.bf16.mxu1 %v2437_v5 }
 0x42d   :  { %v2210_v47 = vpack.c.bf16 %v1609_v45, %v1604_v39  ;;  %v2123_v20 = vpop.f32.mrb[58].mxu0 }
 0x42e   :  { %v1619_v53 = vadd.f32 %v2123_v20, %v1492_v26  ;;  %v1613_v33 = vpop.f32.mrb[59].mxu0 }
 0x42f   :  { %v1614_v6 = vadd.f32 %v1613_v33, %v1491_v50  ;;  %2211 = vmatpush3.bf16.msra.mxu1 %v2210_v47 }
 0x430   :  { %2212 = vmatprep.subr.bf16.mxu1 %v2437_v5 }
 0x431   :  { %v2213_v55 = vpack.c.bf16 %v1619_v53, %v1614_v6  ;;  %v2126_v44 = vpop.f32.mrb[60].mxu0 }
 0x432   :  { %v1629_v56 = vadd.f32 %v2126_v44, %v1494_v38  ;;  %v1623_v40 = vpop.f32.mrb[61].mxu0 }
 0x433   :  { %v1624_v57 = vadd.f32 %v1623_v40, %v1493_v29  ;;  %2214 = vmatpush3.bf16.msra.mxu1 %v2213_v55 }
 0x434   :  { %2215 = vmatprep.subr.bf16.mxu1 %v2437_v5 }
 0x435   :  { %v2216_v49 = vpack.c.bf16 %v1629_v56, %v1624_v57  ;;  %v2129_v58 = vpop.f32.mrb[62].mxu0 }
 0x436   :  { %v1639_v62 = vadd.f32 %v2129_v58, %v1496_v48  ;;  %v1633_v15 = vpop.f32.mrb[63].mxu0 }
 0x437   :  { %v1634_v59 = vadd.f32 %v1633_v15, %v1495_v0  ;;  %2217 = vmatpush3.bf16.msra.mxu1 %v2216_v49 }
 0x438   :  { %2218 = vmatprep.subr.bf16.mxu1 %v2437_v5 }
 0x439   :  { %v2219_v54 = vpack.c.bf16 %v1639_v62, %v1634_v59 }
 0x43b   :  { %2220 = vmatpush3.bf16.msra.mxu1 %v2219_v54 }
 0x43e   :  { %2163 = vmatmul.mubr.f32.vlgmr.msra.gmra.mrb[48].mxu1 %v1643_v2 }
 0x511   :  { %v1710_v43 = vpop.f32.mrb[48].mxu1 }
 0x512   :  { %2304 = vrcp.f32 %v1710_v43  ;;  %v2164_v8 = vpop.f32.mrb[49].mxu1  ;;  %vm1714_vm1 = vcmp.eq.f32.partialorder %v1710_v43, 0.0 }
 0x51c   :  { %v2305_v10 = vpop.eup %2304 }
 0x51d   :  { %v1717_v51 = vsel %vm1714_vm1, 0.0, %v2305_v10 }
 0x51e   :  { %1720 = vperm.xlu0 %2300, %v1717_v51  }
 0x59d   :  { %v1721_v14 = vpop.permute.xlu0 %1720 }
 0x59e   :  { %v1723_v11 = vmul.f32 %v1721_v14, %v1710_v43 }
 0x5a0   :  { %1724 = vst [vmem:[#allocation15] sm:$0xff] %v1723_v11 }
 0x5a1   :  { %2405 = shalt.err (!%p2402_p8)
}
 0x5a2   :  { %s2406_s27 = scalar_lea.hbm %s2935_s9, 128 }
 0x5a3   :  { %p2407_p9 = scmp.ne.s32.totalorder %s2935_s9, %s2406_s27  ;;  %p2410_p10 = scmp.lt.u32.totalorder %s2406_s27, %s2935_s9 }
 0x5a5   :  { %p2412_p11 = pnand %p2410_p10, %p2407_p9 }
 0x5a7   :  { %2415 = shalt.err (!%p2412_p11)
}
 0x5a8   :  { %1734 = dma.vmem_to_hbm [thread:$0]  %s1732_s25, 128, %s2935_s9, [#allocation9]  }
 0x5a9   :  { %2424 = dma.done.wait [#allocation9], 128  }
 0x5aa   :  { %2425 = vsyncadd [#allocation9], 4294967168 }
 0x5ab   :  { %1738 = vsyncpa [#allocation8], 1 }
 0x5ac   :  { %1739 = vsyncpa [#allocation11], 1 }
 0x5ad   :  { %1740 = vsyncpa [#allocation14], 1 }
 0x5ae   :  { %1741 = vsyncpa [#allocation9], 1 }
 0x5af   :  { %1742 = vsyncmov [#allocation6] }
 0x5b2   :  { %s1743_s14 = vpop.sfrf %1742 }
 0x5b3   :  { %p1816_p12 = scmp.ne.s32.totalorder %s1743_s14, 0 }
 0x5b5   :  { %1747 = shalt.err (%p1816_p12)  }

</bundles_post_ra>
